<compile_context>
chip_gen: v7x
topology: tpu7x:2x2x1
jax: 0.10.0
libtpu: 0.0.40
codegen_flags: <defaults>
</compile_context>

<pallas_src>
import functools

import jax
import jax.numpy as jnp
from jax.experimental import pallas as pl
from jax.experimental.pallas import tpu as pltpu


def _izhikevich_kernel(params_ref, w_hbm_ref, x_ref,
                       v_seq_ref, soft_ref, state_ref,
                       w_vmem,
                       *, ch, t_total, mask_tail):
    """One grid step == `ch` fused Izhikevich timesteps.

    params_ref : (8, N) f32, rows = [a, b, c, d, 1/tau_s, v0, u0, s0]
                 (resident in VMEM for the whole grid).
    w_hbm_ref  : (N, N) W_syn^T in HBM (memory_space=pl.ANY); copied once
                 into the `w_vmem` scratch at grid step 0.
    x_ref      : (ch, N) external drive for this chunk of timesteps.
    v_seq_ref  : (ch, N) membrane-potential outputs for this chunk.
    soft_ref   : (ch, N) soft (sigmoid) spike outputs for this chunk.
    state_ref  : (3, N) carried state [v, u, s]; constant index_map keeps it
                 VMEM-resident across the time grid (one HBM writeback).
    w_vmem     : (N, N) VMEM scratch holding W_syn^T for all grid steps.
    """
    g = pl.program_id(0)
    p = params_ref[...]                       # (8, N) f32

    @pl.when(g == 0)
    def _init():
        # One-time HBM->VMEM copy of the weights + state initialization.
        pltpu.sync_copy(w_hbm_ref, w_vmem)
        state_ref[...] = p[5:8]               # [v0, u0, s0]

    a, b, c, d, inv_tau_s = p[0:1], p[1:2], p[2:3], p[3:4], p[4:5]

    st = state_ref[...]                       # (3, N)
    v, u, s = st[0:1], st[1:2], st[2:3]

    w_t = w_vmem[...]                         # (N, N) resident weights
    x_blk = x_ref[...]                        # (ch, N) drive for this chunk

    v_rows = []
    soft_rows = []
    for j in range(ch):                       # trace-time unrolled inner loop
        # I_syn = W_syn @ s computed as row-vector matvec s @ W_syn^T (MXU).
        i_syn = jnp.dot(s.astype(w_t.dtype), w_t,
                        preferred_element_type=jnp.float32)
        x_in = x_blk[j:j + 1, :]              # (1, N)

        dv = 0.04 * v * v + 5.0 * v + 140.0 - u + i_syn + x_in + 0.1
        v_next = v + dv
        u_next = u + a * (b * v - u)          # u + du (pre-update v, u)
        s_next = s - s * inv_tau_s            # s + ds,  ds = -s / tau_s

        spiked = v_next >= 30.0
        soft = jax.nn.sigmoid(v_next - 30.0)

        v_new = jnp.where(spiked, c, v_next)  # == not_spiked*v_next + spiked*c
        u_new = jnp.where(spiked, d, u_next)
        s_new = jnp.where(spiked, 1.0, s_next)

        v_rows.append(v_new)
        soft_rows.append(soft)

        if mask_tail:
            # Freeze the carried state on zero-padded tail steps so the final
            # (v, u, s) matches exactly T applications of the update.
            valid = (g * ch + j) < t_total
            v = jnp.where(valid, v_new, v)
            u = jnp.where(valid, u_new, u)
            s = jnp.where(valid, s_new, s)
        else:
            v, u, s = v_new, u_new, s_new

    # Full-slab writes: one store per output per chunk.
    v_seq_ref[...] = jnp.concatenate(v_rows, axis=0)
    soft_ref[...] = jnp.concatenate(soft_rows, axis=0)
    state_ref[...] = jnp.concatenate([v, u, s], axis=0)


def _vmem_cap_bytes():
    try:
        return int(pltpu.get_tpu_info().vmem_capacity_bytes)
    except Exception:
        return 64 * 2**20   # v7x per-TensorCore VMEM: safe lower bound


@functools.partial(jax.jit, static_argnames=("weight_dtype", "chunk"))
def izhikevich_run(x_seq, v0, u0, s0, a, b, c, d, tau_s, w, neuron_types,
                   weight_dtype=jnp.float32, chunk=8):
    """Run T fused Izhikevich steps.

    Returns ((v_seq, soft_spiked_seq), (v_T, u_T, s_T)); step t of the
    sequences equals what the PyTorch module's forward() would return on its
    t-th sequential call.
    """
    T, N = x_seq.shape
    f32 = jnp.float32

    # Fold the self-recurrence mask and the neuron types into the transposed
    # weights ONCE (outside the per-step loop):
    #   W_syn^T[j, i] = (1 - eye)[i, j] * w[i, j] * nt[j]
    mask = jnp.ones((N, N), f32) - jnp.eye(N, dtype=f32)
    w_syn_t = (mask * w.astype(f32).T *
               neuron_types.astype(f32)[:, None]).astype(weight_dtype)

    inv_tau_s = 1.0 / tau_s.astype(f32)
    params = jnp.stack([a, b, c, d, inv_tau_s, v0, u0, s0]).astype(f32)  # (8,N)

    num_chunks = -(-T // chunk)
    t_pad = num_chunks * chunk
    x2 = x_seq.astype(f32)
    if t_pad != T:
        x2 = jnp.pad(x2, ((0, t_pad - T), (0, 0)))

    kernel = functools.partial(_izhikevich_kernel, ch=chunk, t_total=T,
                               mask_tail=(t_pad != T))

    # Accurate VMEM budget: 1x W (single scratch copy) + double-buffered
    # small operands, capped below the physical per-core VMEM.
    w_bytes = N * N * jnp.dtype(weight_dtype).itemsize
    needed = (w_bytes
              + 2 * 8 * N * 4              # params block
              + 2 * 3 * chunk * N * 4      # x / v_seq / soft chunks
              + 2 * 3 * N * 4)             # carried state block
    cap = _vmem_cap_bytes()
    vmem_limit = int(min(max(needed + (4 << 20), 32 << 20), cap - (8 << 20)))

    grid_spec = pltpu.PrefetchScalarGridSpec(
        num_scalar_prefetch=0,
        grid=(num_chunks,),
        in_specs=[
            pl.BlockSpec((8, N), lambda t: (0, 0)),       # params: resident
            pl.BlockSpec(memory_space=pl.ANY),            # W^T: raw HBM ref
            pl.BlockSpec((chunk, N), lambda t: (t, 0)),   # x chunk: streamed
        ],
        out_specs=[
            pl.BlockSpec((chunk, N), lambda t: (t, 0)),   # v per chunk
            pl.BlockSpec((chunk, N), lambda t: (t, 0)),   # soft spike / chunk
            pl.BlockSpec((3, N), lambda t: (0, 0)),       # final [v, u, s]
        ],
        scratch_shapes=[pltpu.VMEM((N, N), weight_dtype)],
    )

    v_seq, soft_seq, state = pl.pallas_call(
        kernel,
        out_shape=(
            jax.ShapeDtypeStruct((t_pad, N), f32),
            jax.ShapeDtypeStruct((t_pad, N), f32),
            jax.ShapeDtypeStruct((3, N), f32),
        ),
        grid_spec=grid_spec,
        compiler_params=pltpu.CompilerParams(
            dimension_semantics=("arbitrary",),   # recurrence in time
            vmem_limit_bytes=vmem_limit,
        ),
    )(params, w_syn_t, x2)

    return (v_seq[:T], soft_seq[:T]), (state[0], state[1], state[2])


def izhikevich_step(x_in, v, u, s, a, b, c, d, tau_s, w, neuron_types,
                    weight_dtype=jnp.float32):
    """Single forward step (same signature semantics as module.forward)."""
    (v_seq, soft_seq), (v_n, u_n, s_n) = izhikevich_run(
        x_in[None, :], v, u, s, a, b, c, d, tau_s, w, neuron_types,
        weight_dtype=weight_dtype)
    return (v_seq[0], soft_seq[0]), (v_n, u_n, s_n)


def _ref_run(x_seq, v0, u0, s0, a, b, c, d, tau_s, w, nt):
    """Pure-JAX reference: T sequential applications of the PyTorch forward."""
    N = v0.shape[0]
    mask = jnp.ones((N, N)) - jnp.eye(N)
    neuron_types = nt[None, :] * jnp.ones((N, N))
    W_syn = mask * w * neuron_types

    def step(carry, x_in):
        v, u, s = carry
        I = W_syn @ s + x_in
        dv = 0.04 * v * v + 5.0 * v + 140.0 - u + I + 0.1
        v_next = v + dv
        du = a * (b * v - u)
        ds = -s / tau_s
        spiked = jnp.where(v_next >= 30.0, 1.0, 0.0)
        not_spiked = (spiked - 1.0) / -1.0
        soft = jax.nn.sigmoid(v_next - 30.0)
        v_new = not_spiked * v_next + spiked * c
        u_new = not_spiked * (u + du) + spiked * d
        s_new = not_spiked * (s + ds) + spiked
        return (v_new, u_new, s_new), (v_new, soft)

    (v_T, u_T, s_T), (v_seq, soft_seq) = jax.lax.scan(step, (v0, u0, s0), x_seq)
    return v_seq, soft_seq, v_T, u_T, s_T


if __name__ == "__main__":
    # T=12 with CH=8 exercises multiple grid steps, the VMEM-carried state,
    # and the zero-padded / masked tail (T not a multiple of the chunk).
    N, T = 128, 12
    key = jax.random.PRNGKey(0)
    k_w, k_x, k_s = jax.random.split(key, 3)

    # Deterministic parameter init (matches module __init__ shapes/intervals).
    w_mean, w_var = 0.6, 0.15
    w = w_mean - w_var + 2.0 * w_var * jnp.abs(
        jax.random.uniform(k_w, (N, N), dtype=jnp.float32))
    a = jnp.full((N,), 0.035, jnp.float32)     # [0.02, 0.05]
    b = jnp.full((N,), 0.25, jnp.float32)      # [0.25, 0.25]
    c = jnp.full((N,), -60.0, jnp.float32)     # [-62, -58]
    d = jnp.full((N,), 6.0, jnp.float32)       # [4, 8]
    tau_s = jnp.full((N,), 2.75, jnp.float32)  # [2.0, 3.5]
    neuron_types = jnp.where(jnp.arange(N) < N // 2, 1.0, -1.0).astype(jnp.float32)

    # Initial hidden state, as in __init__.
    v0 = c * jnp.ones((N,), jnp.float32)
    u0 = d * jnp.ones((N,), jnp.float32)
    s0 = jnp.abs(jax.random.uniform(k_s, (N,), dtype=jnp.float32))

    x_seq = 3.0 * jax.random.normal(k_x, (T, N), dtype=jnp.float32)
    # Drive a few neurons hard on the first step so the spike/reset branch is
    # exercised far from the threshold (robust to accumulation-order noise).
    x_seq = x_seq.at[0, :8].add(200.0)

    rv, rsoft, rvT, ruT, rsT = _ref_run(x_seq, v0, u0, s0, a, b, c, d, tau_s,
                                        w, neuron_types)

    # Default (float32-weight) path: strict check vs. the pure-JAX reference.
    (v_seq, soft_seq), (vT, uT, sT) = izhikevich_run(
        x_seq, v0, u0, s0, a, b, c, d, tau_s, w, neuron_types)
    jax.block_until_ready((v_seq, soft_seq, vT, uT, sT))
    for got, ref in ((v_seq, rv), (soft_seq, rsoft), (vT, rvT), (uT, ruT),
                     (sT, rsT)):
        assert got.shape == ref.shape
        assert jnp.allclose(got, ref, rtol=1e-2, atol=1e-2), "f32 mismatch"

    # Single-step convenience wrapper (module.forward equivalent).
    (v1, soft1), _ = izhikevich_step(x_seq[0], v0, u0, s0, a, b, c, d, tau_s,
                                     w, neuron_types)
    jax.block_until_ready((v1, soft1))
    assert jnp.allclose(v1, rv[0], rtol=1e-2, atol=1e-2), "step v mismatch"
    assert jnp.allclose(soft1, rsoft[0], rtol=1e-2, atol=1e-2), "step soft mismatch"

    # bf16-weight path is now an explicit OPT-IN (reduced precision can flip a
    # hard-threshold spike in the recurrent loop and diverge the trajectory),
    # so only sanity-check it: shape/finiteness + first step (no accumulated
    # rounding divergence yet).
    (v_b, soft_b), (vT_b, uT_b, sT_b) = izhikevich_run(
        x_seq, v0, u0, s0, a, b, c, d, tau_s, w, neuron_types,
        weight_dtype=jnp.bfloat16)
    jax.block_until_ready((v_b, soft_b, vT_b, uT_b, sT_b))
    assert v_b.shape == (T, N) and soft_b.shape == (T, N)
    assert bool(jnp.all(jnp.isfinite(v_b))) and bool(jnp.all(jnp.isfinite(soft_b)))
    assert jnp.allclose(v_b[0], rv[0], rtol=5e-2, atol=5e-2), "bf16 step-0 mismatch"

    # TODO(synk): int8 (v5e/v6e) / fp8 (v7x) per-row-scaled weight paths and a
    # two-TensorCore split of the neuron axis are left out; only relevant for
    # much larger N than exercised here.
    print("KERNEL_OK")
</pallas_src>

<mosaic_0001>
module attributes {stable_mosaic.version = 11 : i64} {
  func.func @_izhikevich_kernel(%arg0: i32, %arg1: memref<8x128xf32, #tpu.memory_space<vmem>>, %arg2: memref<128x128xf32, #tpu.memory_space<any>>, %arg3: memref<8x128xf32, #tpu.memory_space<vmem>>, %arg4: memref<8x128xf32, #tpu.memory_space<vmem>>, %arg5: memref<8x128xf32, #tpu.memory_space<vmem>>, %arg6: memref<3x128xf32, #tpu.memory_space<vmem>>, %arg7: memref<128x128xf32, #tpu.memory_space<vmem>>) attributes {dimension_semantics = [#tpu.dimension_semantics<arbitrary>], iteration_bounds = array<i64: 2>, scalar_prefetch = 0 : i64, scratch_operands = 1 : i64, tpu.core_type = #tpu.core_type<tc>, window_params = [{pipeline_mode = #tpu.pipeline_mode<synchronous>, transform_indices = @transform_0, window_bounds = array<i64: 8, 128>}, {}, {transform_indices = @transform_2, window_bounds = array<i64: 8, 128>}, {transform_indices = @transform_3, window_bounds = array<i64: 8, 128>}, {transform_indices = @transform_4, window_bounds = array<i64: 8, 128>}, {pipeline_mode = #tpu.pipeline_mode<synchronous>, transform_indices = @transform_5, window_bounds = array<i64: 3, 128>}]} {
    %c0 = arith.constant 0 : index
    %c0_0 = arith.constant 0 : index
    %0 = vector.load %arg1[%c0, %c0_0] : memref<8x128xf32, #tpu.memory_space<vmem>>, vector<8x128xf32>
    %c0_i32 = arith.constant 0 : i32
    %1 = arith.cmpi eq, %arg0, %c0_i32 : i32
    %2 = arith.extui %1 : i1 to i32
    %c0_i32_1 = arith.constant 0 : i32
    %3 = arith.cmpi ne, %2, %c0_i32_1 : i32
    scf.if %3 {
      "tpu.region"() ({
        %351 = tpu.sem_alloc : memref<!tpu.dma_semaphore, #tpu.memory_space<semaphore_mem>>
        tpu.enqueue_dma source(%arg2 : memref<128x128xf32, #tpu.memory_space<any>>) target(%arg7 : memref<128x128xf32, #tpu.memory_space<vmem>>) target_semaphore(%351 : memref<!tpu.dma_semaphore, #tpu.memory_space<semaphore_mem>>)
        tpu.wait_dma2 semaphore(%351 : memref<!tpu.dma_semaphore, #tpu.memory_space<semaphore_mem>>) src(%arg2 : memref<128x128xf32, #tpu.memory_space<any>>) dst(%arg7 : memref<128x128xf32, #tpu.memory_space<vmem>>)
        tpu.yield
      }) : () -> ()
      %349 = vector.extract_strided_slice %0 {offsets = [5, 0], sizes = [3, 128], strides = [1, 1]} : vector<8x128xf32> to vector<3x128xf32>
      %c0_100 = arith.constant 0 : index
      %c0_101 = arith.constant 0 : index
      %350 = vector.load %arg6[%c0_100, %c0_101] : memref<3x128xf32, #tpu.memory_space<vmem>>, vector<3x128xf32>
      tpu.vector_store %arg6[%c0_100, %c0_101], %349 {strides = array<i32>} : memref<3x128xf32, #tpu.memory_space<vmem>>, vector<3x128xf32>,
    } else {
    }
    %4 = vector.extract_strided_slice %0 {offsets = [0, 0], sizes = [1, 128], strides = [1, 1]} : vector<8x128xf32> to vector<1x128xf32>
    %5 = vector.extract_strided_slice %0 {offsets = [1, 0], sizes = [1, 128], strides = [1, 1]} : vector<8x128xf32> to vector<1x128xf32>
    %6 = vector.extract_strided_slice %0 {offsets = [2, 0], sizes = [1, 128], strides = [1, 1]} : vector<8x128xf32> to vector<1x128xf32>
    %7 = vector.extract_strided_slice %0 {offsets = [3, 0], sizes = [1, 128], strides = [1, 1]} : vector<8x128xf32> to vector<1x128xf32>
    %8 = vector.extract_strided_slice %0 {offsets = [4, 0], sizes = [1, 128], strides = [1, 1]} : vector<8x128xf32> to vector<1x128xf32>
    %c0_2 = arith.constant 0 : index
    %c0_3 = arith.constant 0 : index
    %9 = vector.load %arg6[%c0_2, %c0_3] : memref<3x128xf32, #tpu.memory_space<vmem>>, vector<3x128xf32>
    %10 = vector.extract_strided_slice %9 {offsets = [0, 0], sizes = [1, 128], strides = [1, 1]} : vector<3x128xf32> to vector<1x128xf32>
    %11 = vector.extract_strided_slice %9 {offsets = [1, 0], sizes = [1, 128], strides = [1, 1]} : vector<3x128xf32> to vector<1x128xf32>
    %12 = vector.extract_strided_slice %9 {offsets = [2, 0], sizes = [1, 128], strides = [1, 1]} : vector<3x128xf32> to vector<1x128xf32>
    %c0_4 = arith.constant 0 : index
    %c0_5 = arith.constant 0 : index
    %13 = vector.load %arg7[%c0_4, %c0_5] : memref<128x128xf32, #tpu.memory_space<vmem>>, vector<128x128xf32>
    %c0_6 = arith.constant 0 : index
    %c0_7 = arith.constant 0 : index
    %14 = vector.load %arg3[%c0_6, %c0_7] : memref<8x128xf32, #tpu.memory_space<vmem>>, vector<8x128xf32>
    %cst = arith.constant dense<0.000000e+00> : vector<1x128xf32>
    %15 = tpu.matmul %12, %13, %cst {dimension_numbers = #tpu.dot_dimension_numbers<[1], [0], [0], [1], [0, 0, 1, 1], [], []>} : vector<1x128xf32>, vector<128x128xf32>, vector<1x128xf32> -> vector<1x128xf32>
    %16 = vector.extract_strided_slice %14 {offsets = [0, 0], sizes = [1, 128], strides = [1, 1]} : vector<8x128xf32> to vector<1x128xf32>
    %cst_8 = arith.constant 4.000000e-02 : f32
    %17 = vector.broadcast %cst_8 : f32 to vector<1x128xf32>
    %18 = arith.mulf %17, %10 : vector<1x128xf32>
    %19 = arith.mulf %18, %10 : vector<1x128xf32>
    %cst_9 = arith.constant 5.000000e+00 : f32
    %20 = vector.broadcast %cst_9 : f32 to vector<1x128xf32>
    %21 = arith.mulf %20, %10 : vector<1x128xf32>
    %22 = arith.addf %19, %21 : vector<1x128xf32>
    %cst_10 = arith.constant 1.400000e+02 : f32
    %23 = vector.broadcast %cst_10 : f32 to vector<1x128xf32>
    %24 = arith.addf %22, %23 : vector<1x128xf32>
    %25 = arith.subf %24, %11 : vector<1x128xf32>
    %26 = arith.addf %25, %15 : vector<1x128xf32>
    %27 = arith.addf %26, %16 : vector<1x128xf32>
    %cst_11 = arith.constant 1.000000e-01 : f32
    %28 = vector.broadcast %cst_11 : f32 to vector<1x128xf32>
    %29 = arith.addf %27, %28 : vector<1x128xf32>
    %30 = arith.addf %10, %29 : vector<1x128xf32>
    %31 = arith.mulf %5, %10 : vector<1x128xf32>
    %32 = arith.subf %31, %11 : vector<1x128xf32>
    %33 = arith.mulf %4, %32 : vector<1x128xf32>
    %34 = arith.addf %11, %33 : vector<1x128xf32>
    %35 = arith.mulf %12, %8 : vector<1x128xf32>
    %36 = arith.subf %12, %35 : vector<1x128xf32>
    %cst_12 = arith.constant 3.000000e+01 : f32
    %37 = vector.broadcast %cst_12 : f32 to vector<1x128xf32>
    %38 = arith.cmpf oge, %30, %37 : vector<1x128xf32>
    %cst_13 = arith.constant 3.000000e+01 : f32
    %39 = vector.broadcast %cst_13 : f32 to vector<1x128xf32>
    %40 = arith.subf %30, %39 : vector<1x128xf32>
    %41 = arith.negf %40 : vector<1x128xf32>
    %42 = math.exp %41 : vector<1x128xf32>
    %cst_14 = arith.constant 1.000000e+00 : f32
    %43 = vector.broadcast %cst_14 : f32 to vector<1x128xf32>
    %44 = arith.addf %43, %42 : vector<1x128xf32>
    %45 = arith.divf %43, %44 : vector<1x128xf32>
    %46 = arith.select %38, %6, %30 : vector<1x128xi1>, vector<1x128xf32>
    %47 = arith.select %38, %7, %34 : vector<1x128xi1>, vector<1x128xf32>
    %cst_15 = arith.constant 1.000000e+00 : f32
    %48 = vector.broadcast %cst_15 : f32 to vector<1x128xf32>
    %49 = arith.select %38, %48, %36 : vector<1x128xi1>, vector<1x128xf32>
    %c8_i32 = arith.constant 8 : i32
    %50 = arith.muli %arg0, %c8_i32 : i32
    %c0_i32_16 = arith.constant 0 : i32
    %51 = arith.addi %50, %c0_i32_16 : i32
    %c12_i32 = arith.constant 12 : i32
    %52 = arith.cmpi slt, %51, %c12_i32 : i32
    %53 = arith.select %52, %46, %10 : vector<1x128xf32>
    %54 = arith.select %52, %47, %11 : vector<1x128xf32>
    %55 = arith.select %52, %49, %12 : vector<1x128xf32>
    %cst_17 = arith.constant dense<0.000000e+00> : vector<1x128xf32>
    %56 = tpu.matmul %55, %13, %cst_17 {dimension_numbers = #tpu.dot_dimension_numbers<[1], [0], [0], [1], [0, 0, 1, 1], [], []>} : vector<1x128xf32>, vector<128x128xf32>, vector<1x128xf32> -> vector<1x128xf32>
    %57 = vector.extract_strided_slice %14 {offsets = [1, 0], sizes = [1, 128], strides = [1, 1]} : vector<8x128xf32> to vector<1x128xf32>
    %cst_18 = arith.constant 4.000000e-02 : f32
    %58 = vector.broadcast %cst_18 : f32 to vector<1x128xf32>
    %59 = arith.mulf %58, %53 : vector<1x128xf32>
    %60 = arith.mulf %59, %53 : vector<1x128xf32>
    %cst_19 = arith.constant 5.000000e+00 : f32
    %61 = vector.broadcast %cst_19 : f32 to vector<1x128xf32>
    %62 = arith.mulf %61, %53 : vector<1x128xf32>
    %63 = arith.addf %60, %62 : vector<1x128xf32>
    %cst_20 = arith.constant 1.400000e+02 : f32
    %64 = vector.broadcast %cst_20 : f32 to vector<1x128xf32>
    %65 = arith.addf %63, %64 : vector<1x128xf32>
    %66 = arith.subf %65, %54 : vector<1x128xf32>
    %67 = arith.addf %66, %56 : vector<1x128xf32>
    %68 = arith.addf %67, %57 : vector<1x128xf32>
    %cst_21 = arith.constant 1.000000e-01 : f32
    %69 = vector.broadcast %cst_21 : f32 to vector<1x128xf32>
    %70 = arith.addf %68, %69 : vector<1x128xf32>
    %71 = arith.addf %53, %70 : vector<1x128xf32>
    %72 = arith.mulf %5, %53 : vector<1x128xf32>
    %73 = arith.subf %72, %54 : vector<1x128xf32>
    %74 = arith.mulf %4, %73 : vector<1x128xf32>
    %75 = arith.addf %54, %74 : vector<1x128xf32>
    %76 = arith.mulf %55, %8 : vector<1x128xf32>
    %77 = arith.subf %55, %76 : vector<1x128xf32>
    %cst_22 = arith.constant 3.000000e+01 : f32
    %78 = vector.broadcast %cst_22 : f32 to vector<1x128xf32>
    %79 = arith.cmpf oge, %71, %78 : vector<1x128xf32>
    %cst_23 = arith.constant 3.000000e+01 : f32
    %80 = vector.broadcast %cst_23 : f32 to vector<1x128xf32>
    %81 = arith.subf %71, %80 : vector<1x128xf32>
    %82 = arith.negf %81 : vector<1x128xf32>
    %83 = math.exp %82 : vector<1x128xf32>
    %cst_24 = arith.constant 1.000000e+00 : f32
    %84 = vector.broadcast %cst_24 : f32 to vector<1x128xf32>
    %85 = arith.addf %84, %83 : vector<1x128xf32>
    %86 = arith.divf %84, %85 : vector<1x128xf32>
    %87 = arith.select %79, %6, %71 : vector<1x128xi1>, vector<1x128xf32>
    %88 = arith.select %79, %7, %75 : vector<1x128xi1>, vector<1x128xf32>
    %cst_25 = arith.constant 1.000000e+00 : f32
    %89 = vector.broadcast %cst_25 : f32 to vector<1x128xf32>
    %90 = arith.select %79, %89, %77 : vector<1x128xi1>, vector<1x128xf32>
    %c8_i32_26 = arith.constant 8 : i32
    %91 = arith.muli %arg0, %c8_i32_26 : i32
    %c1_i32 = arith.constant 1 : i32
    %92 = arith.addi %91, %c1_i32 : i32
    %c12_i32_27 = arith.constant 12 : i32
    %93 = arith.cmpi slt, %92, %c12_i32_27 : i32
    %94 = arith.select %93, %87, %53 : vector<1x128xf32>
    %95 = arith.select %93, %88, %54 : vector<1x128xf32>
    %96 = arith.select %93, %90, %55 : vector<1x128xf32>
    %cst_28 = arith.constant dense<0.000000e+00> : vector<1x128xf32>
    %97 = tpu.matmul %96, %13, %cst_28 {dimension_numbers = #tpu.dot_dimension_numbers<[1], [0], [0], [1], [0, 0, 1, 1], [], []>} : vector<1x128xf32>, vector<128x128xf32>, vector<1x128xf32> -> vector<1x128xf32>
    %98 = vector.extract_strided_slice %14 {offsets = [2, 0], sizes = [1, 128], strides = [1, 1]} : vector<8x128xf32> to vector<1x128xf32>
    %cst_29 = arith.constant 4.000000e-02 : f32
    %99 = vector.broadcast %cst_29 : f32 to vector<1x128xf32>
    %100 = arith.mulf %99, %94 : vector<1x128xf32>
    %101 = arith.mulf %100, %94 : vector<1x128xf32>
    %cst_30 = arith.constant 5.000000e+00 : f32
    %102 = vector.broadcast %cst_30 : f32 to vector<1x128xf32>
    %103 = arith.mulf %102, %94 : vector<1x128xf32>
    %104 = arith.addf %101, %103 : vector<1x128xf32>
    %cst_31 = arith.constant 1.400000e+02 : f32
    %105 = vector.broadcast %cst_31 : f32 to vector<1x128xf32>
    %106 = arith.addf %104, %105 : vector<1x128xf32>
    %107 = arith.subf %106, %95 : vector<1x128xf32>
    %108 = arith.addf %107, %97 : vector<1x128xf32>
    %109 = arith.addf %108, %98 : vector<1x128xf32>
    %cst_32 = arith.constant 1.000000e-01 : f32
    %110 = vector.broadcast %cst_32 : f32 to vector<1x128xf32>
    %111 = arith.addf %109, %110 : vector<1x128xf32>
    %112 = arith.addf %94, %111 : vector<1x128xf32>
    %113 = arith.mulf %5, %94 : vector<1x128xf32>
    %114 = arith.subf %113, %95 : vector<1x128xf32>
    %115 = arith.mulf %4, %114 : vector<1x128xf32>
    %116 = arith.addf %95, %115 : vector<1x128xf32>
    %117 = arith.mulf %96, %8 : vector<1x128xf32>
    %118 = arith.subf %96, %117 : vector<1x128xf32>
    %cst_33 = arith.constant 3.000000e+01 : f32
    %119 = vector.broadcast %cst_33 : f32 to vector<1x128xf32>
    %120 = arith.cmpf oge, %112, %119 : vector<1x128xf32>
    %cst_34 = arith.constant 3.000000e+01 : f32
    %121 = vector.broadcast %cst_34 : f32 to vector<1x128xf32>
    %122 = arith.subf %112, %121 : vector<1x128xf32>
    %123 = arith.negf %122 : vector<1x128xf32>
    %124 = math.exp %123 : vector<1x128xf32>
    %cst_35 = arith.constant 1.000000e+00 : f32
    %125 = vector.broadcast %cst_35 : f32 to vector<1x128xf32>
    %126 = arith.addf %125, %124 : vector<1x128xf32>
    %127 = arith.divf %125, %126 : vector<1x128xf32>
    %128 = arith.select %120, %6, %112 : vector<1x128xi1>, vector<1x128xf32>
    %129 = arith.select %120, %7, %116 : vector<1x128xi1>, vector<1x128xf32>
    %cst_36 = arith.constant 1.000000e+00 : f32
    %130 = vector.broadcast %cst_36 : f32 to vector<1x128xf32>
    %131 = arith.select %120, %130, %118 : vector<1x128xi1>, vector<1x128xf32>
    %c8_i32_37 = arith.constant 8 : i32
    %132 = arith.muli %arg0, %c8_i32_37 : i32
    %c2_i32 = arith.constant 2 : i32
    %133 = arith.addi %132, %c2_i32 : i32
    %c12_i32_38 = arith.constant 12 : i32
    %134 = arith.cmpi slt, %133, %c12_i32_38 : i32
    %135 = arith.select %134, %128, %94 : vector<1x128xf32>
    %136 = arith.select %134, %129, %95 : vector<1x128xf32>
    %137 = arith.select %134, %131, %96 : vector<1x128xf32>
    %cst_39 = arith.constant dense<0.000000e+00> : vector<1x128xf32>
    %138 = tpu.matmul %137, %13, %cst_39 {dimension_numbers = #tpu.dot_dimension_numbers<[1], [0], [0], [1], [0, 0, 1, 1], [], []>} : vector<1x128xf32>, vector<128x128xf32>, vector<1x128xf32> -> vector<1x128xf32>
    %139 = vector.extract_strided_slice %14 {offsets = [3, 0], sizes = [1, 128], strides = [1, 1]} : vector<8x128xf32> to vector<1x128xf32>
    %cst_40 = arith.constant 4.000000e-02 : f32
    %140 = vector.broadcast %cst_40 : f32 to vector<1x128xf32>
    %141 = arith.mulf %140, %135 : vector<1x128xf32>
    %142 = arith.mulf %141, %135 : vector<1x128xf32>
    %cst_41 = arith.constant 5.000000e+00 : f32
    %143 = vector.broadcast %cst_41 : f32 to vector<1x128xf32>
    %144 = arith.mulf %143, %135 : vector<1x128xf32>
    %145 = arith.addf %142, %144 : vector<1x128xf32>
    %cst_42 = arith.constant 1.400000e+02 : f32
    %146 = vector.broadcast %cst_42 : f32 to vector<1x128xf32>
    %147 = arith.addf %145, %146 : vector<1x128xf32>
    %148 = arith.subf %147, %136 : vector<1x128xf32>
    %149 = arith.addf %148, %138 : vector<1x128xf32>
    %150 = arith.addf %149, %139 : vector<1x128xf32>
    %cst_43 = arith.constant 1.000000e-01 : f32
    %151 = vector.broadcast %cst_43 : f32 to vector<1x128xf32>
    %152 = arith.addf %150, %151 : vector<1x128xf32>
    %153 = arith.addf %135, %152 : vector<1x128xf32>
    %154 = arith.mulf %5, %135 : vector<1x128xf32>
    %155 = arith.subf %154, %136 : vector<1x128xf32>
    %156 = arith.mulf %4, %155 : vector<1x128xf32>
    %157 = arith.addf %136, %156 : vector<1x128xf32>
    %158 = arith.mulf %137, %8 : vector<1x128xf32>
    %159 = arith.subf %137, %158 : vector<1x128xf32>
    %cst_44 = arith.constant 3.000000e+01 : f32
    %160 = vector.broadcast %cst_44 : f32 to vector<1x128xf32>
    %161 = arith.cmpf oge, %153, %160 : vector<1x128xf32>
    %cst_45 = arith.constant 3.000000e+01 : f32
    %162 = vector.broadcast %cst_45 : f32 to vector<1x128xf32>
    %163 = arith.subf %153, %162 : vector<1x128xf32>
    %164 = arith.negf %163 : vector<1x128xf32>
    %165 = math.exp %164 : vector<1x128xf32>
    %cst_46 = arith.constant 1.000000e+00 : f32
    %166 = vector.broadcast %cst_46 : f32 to vector<1x128xf32>
    %167 = arith.addf %166, %165 : vector<1x128xf32>
    %168 = arith.divf %166, %167 : vector<1x128xf32>
    %169 = arith.select %161, %6, %153 : vector<1x128xi1>, vector<1x128xf32>
    %170 = arith.select %161, %7, %157 : vector<1x128xi1>, vector<1x128xf32>
    %cst_47 = arith.constant 1.000000e+00 : f32
    %171 = vector.broadcast %cst_47 : f32 to vector<1x128xf32>
    %172 = arith.select %161, %171, %159 : vector<1x128xi1>, vector<1x128xf32>
    %c8_i32_48 = arith.constant 8 : i32
    %173 = arith.muli %arg0, %c8_i32_48 : i32
    %c3_i32 = arith.constant 3 : i32
    %174 = arith.addi %173, %c3_i32 : i32
    %c12_i32_49 = arith.constant 12 : i32
    %175 = arith.cmpi slt, %174, %c12_i32_49 : i32
    %176 = arith.select %175, %169, %135 : vector<1x128xf32>
    %177 = arith.select %175, %170, %136 : vector<1x128xf32>
    %178 = arith.select %175, %172, %137 : vector<1x128xf32>
    %cst_50 = arith.constant dense<0.000000e+00> : vector<1x128xf32>
    %179 = tpu.matmul %178, %13, %cst_50 {dimension_numbers = #tpu.dot_dimension_numbers<[1], [0], [0], [1], [0, 0, 1, 1], [], []>} : vector<1x128xf32>, vector<128x128xf32>, vector<1x128xf32> -> vector<1x128xf32>
    %180 = vector.extract_strided_slice %14 {offsets = [4, 0], sizes = [1, 128], strides = [1, 1]} : vector<8x128xf32> to vector<1x128xf32>
    %cst_51 = arith.constant 4.000000e-02 : f32
    %181 = vector.broadcast %cst_51 : f32 to vector<1x128xf32>
    %182 = arith.mulf %181, %176 : vector<1x128xf32>
    %183 = arith.mulf %182, %176 : vector<1x128xf32>
    %cst_52 = arith.constant 5.000000e+00 : f32
    %184 = vector.broadcast %cst_52 : f32 to vector<1x128xf32>
    %185 = arith.mulf %184, %176 : vector<1x128xf32>
    %186 = arith.addf %183, %185 : vector<1x128xf32>
    %cst_53 = arith.constant 1.400000e+02 : f32
    %187 = vector.broadcast %cst_53 : f32 to vector<1x128xf32>
    %188 = arith.addf %186, %187 : vector<1x128xf32>
    %189 = arith.subf %188, %177 : vector<1x128xf32>
    %190 = arith.addf %189, %179 : vector<1x128xf32>
    %191 = arith.addf %190, %180 : vector<1x128xf32>
    %cst_54 = arith.constant 1.000000e-01 : f32
    %192 = vector.broadcast %cst_54 : f32 to vector<1x128xf32>
    %193 = arith.addf %191, %192 : vector<1x128xf32>
    %194 = arith.addf %176, %193 : vector<1x128xf32>
    %195 = arith.mulf %5, %176 : vector<1x128xf32>
    %196 = arith.subf %195, %177 : vector<1x128xf32>
    %197 = arith.mulf %4, %196 : vector<1x128xf32>
    %198 = arith.addf %177, %197 : vector<1x128xf32>
    %199 = arith.mulf %178, %8 : vector<1x128xf32>
    %200 = arith.subf %178, %199 : vector<1x128xf32>
    %cst_55 = arith.constant 3.000000e+01 : f32
    %201 = vector.broadcast %cst_55 : f32 to vector<1x128xf32>
    %202 = arith.cmpf oge, %194, %201 : vector<1x128xf32>
    %cst_56 = arith.constant 3.000000e+01 : f32
    %203 = vector.broadcast %cst_56 : f32 to vector<1x128xf32>
    %204 = arith.subf %194, %203 : vector<1x128xf32>
    %205 = arith.negf %204 : vector<1x128xf32>
    %206 = math.exp %205 : vector<1x128xf32>
    %cst_57 = arith.constant 1.000000e+00 : f32
    %207 = vector.broadcast %cst_57 : f32 to vector<1x128xf32>
    %208 = arith.addf %207, %206 : vector<1x128xf32>
    %209 = arith.divf %207, %208 : vector<1x128xf32>
    %210 = arith.select %202, %6, %194 : vector<1x128xi1>, vector<1x128xf32>
    %211 = arith.select %202, %7, %198 : vector<1x128xi1>, vector<1x128xf32>
    %cst_58 = arith.constant 1.000000e+00 : f32
    %212 = vector.broadcast %cst_58 : f32 to vector<1x128xf32>
    %213 = arith.select %202, %212, %200 : vector<1x128xi1>, vector<1x128xf32>
    %c8_i32_59 = arith.constant 8 : i32
    %214 = arith.muli %arg0, %c8_i32_59 : i32
    %c4_i32 = arith.constant 4 : i32
    %215 = arith.addi %214, %c4_i32 : i32
    %c12_i32_60 = arith.constant 12 : i32
    %216 = arith.cmpi slt, %215, %c12_i32_60 : i32
    %217 = arith.select %216, %210, %176 : vector<1x128xf32>
    %218 = arith.select %216, %211, %177 : vector<1x128xf32>
    %219 = arith.select %216, %213, %178 : vector<1x128xf32>
    %cst_61 = arith.constant dense<0.000000e+00> : vector<1x128xf32>
    %220 = tpu.matmul %219, %13, %cst_61 {dimension_numbers = #tpu.dot_dimension_numbers<[1], [0], [0], [1], [0, 0, 1, 1], [], []>} : vector<1x128xf32>, vector<128x128xf32>, vector<1x128xf32> -> vector<1x128xf32>
    %221 = vector.extract_strided_slice %14 {offsets = [5, 0], sizes = [1, 128], strides = [1, 1]} : vector<8x128xf32> to vector<1x128xf32>
    %cst_62 = arith.constant 4.000000e-02 : f32
    %222 = vector.broadcast %cst_62 : f32 to vector<1x128xf32>
    %223 = arith.mulf %222, %217 : vector<1x128xf32>
    %224 = arith.mulf %223, %217 : vector<1x128xf32>
    %cst_63 = arith.constant 5.000000e+00 : f32
    %225 = vector.broadcast %cst_63 : f32 to vector<1x128xf32>
    %226 = arith.mulf %225, %217 : vector<1x128xf32>
    %227 = arith.addf %224, %226 : vector<1x128xf32>
    %cst_64 = arith.constant 1.400000e+02 : f32
    %228 = vector.broadcast %cst_64 : f32 to vector<1x128xf32>
    %229 = arith.addf %227, %228 : vector<1x128xf32>
    %230 = arith.subf %229, %218 : vector<1x128xf32>
    %231 = arith.addf %230, %220 : vector<1x128xf32>
    %232 = arith.addf %231, %221 : vector<1x128xf32>
    %cst_65 = arith.constant 1.000000e-01 : f32
    %233 = vector.broadcast %cst_65 : f32 to vector<1x128xf32>
    %234 = arith.addf %232, %233 : vector<1x128xf32>
    %235 = arith.addf %217, %234 : vector<1x128xf32>
    %236 = arith.mulf %5, %217 : vector<1x128xf32>
    %237 = arith.subf %236, %218 : vector<1x128xf32>
    %238 = arith.mulf %4, %237 : vector<1x128xf32>
    %239 = arith.addf %218, %238 : vector<1x128xf32>
    %240 = arith.mulf %219, %8 : vector<1x128xf32>
    %241 = arith.subf %219, %240 : vector<1x128xf32>
    %cst_66 = arith.constant 3.000000e+01 : f32
    %242 = vector.broadcast %cst_66 : f32 to vector<1x128xf32>
    %243 = arith.cmpf oge, %235, %242 : vector<1x128xf32>
    %cst_67 = arith.constant 3.000000e+01 : f32
    %244 = vector.broadcast %cst_67 : f32 to vector<1x128xf32>
    %245 = arith.subf %235, %244 : vector<1x128xf32>
    %246 = arith.negf %245 : vector<1x128xf32>
    %247 = math.exp %246 : vector<1x128xf32>
    %cst_68 = arith.constant 1.000000e+00 : f32
    %248 = vector.broadcast %cst_68 : f32 to vector<1x128xf32>
    %249 = arith.addf %248, %247 : vector<1x128xf32>
    %250 = arith.divf %248, %249 : vector<1x128xf32>
    %251 = arith.select %243, %6, %235 : vector<1x128xi1>, vector<1x128xf32>
    %252 = arith.select %243, %7, %239 : vector<1x128xi1>, vector<1x128xf32>
    %cst_69 = arith.constant 1.000000e+00 : f32
    %253 = vector.broadcast %cst_69 : f32 to vector<1x128xf32>
    %254 = arith.select %243, %253, %241 : vector<1x128xi1>, vector<1x128xf32>
    %c8_i32_70 = arith.constant 8 : i32
    %255 = arith.muli %arg0, %c8_i32_70 : i32
    %c5_i32 = arith.constant 5 : i32
    %256 = arith.addi %255, %c5_i32 : i32
    %c12_i32_71 = arith.constant 12 : i32
    %257 = arith.cmpi slt, %256, %c12_i32_71 : i32
    %258 = arith.select %257, %251, %217 : vector<1x128xf32>
    %259 = arith.select %257, %252, %218 : vector<1x128xf32>
    %260 = arith.select %257, %254, %219 : vector<1x128xf32>
    %cst_72 = arith.constant dense<0.000000e+00> : vector<1x128xf32>
    %261 = tpu.matmul %260, %13, %cst_72 {dimension_numbers = #tpu.dot_dimension_numbers<[1], [0], [0], [1], [0, 0, 1, 1], [], []>} : vector<1x128xf32>, vector<128x128xf32>, vector<1x128xf32> -> vector<1x128xf32>
    %262 = vector.extract_strided_slice %14 {offsets = [6, 0], sizes = [1, 128], strides = [1, 1]} : vector<8x128xf32> to vector<1x128xf32>
    %cst_73 = arith.constant 4.000000e-02 : f32
    %263 = vector.broadcast %cst_73 : f32 to vector<1x128xf32>
    %264 = arith.mulf %263, %258 : vector<1x128xf32>
    %265 = arith.mulf %264, %258 : vector<1x128xf32>
    %cst_74 = arith.constant 5.000000e+00 : f32
    %266 = vector.broadcast %cst_74 : f32 to vector<1x128xf32>
    %267 = arith.mulf %266, %258 : vector<1x128xf32>
    %268 = arith.addf %265, %267 : vector<1x128xf32>
    %cst_75 = arith.constant 1.400000e+02 : f32
    %269 = vector.broadcast %cst_75 : f32 to vector<1x128xf32>
    %270 = arith.addf %268, %269 : vector<1x128xf32>
    %271 = arith.subf %270, %259 : vector<1x128xf32>
    %272 = arith.addf %271, %261 : vector<1x128xf32>
    %273 = arith.addf %272, %262 : vector<1x128xf32>
    %cst_76 = arith.constant 1.000000e-01 : f32
    %274 = vector.broadcast %cst_76 : f32 to vector<1x128xf32>
    %275 = arith.addf %273, %274 : vector<1x128xf32>
    %276 = arith.addf %258, %275 : vector<1x128xf32>
    %277 = arith.mulf %5, %258 : vector<1x128xf32>
    %278 = arith.subf %277, %259 : vector<1x128xf32>
    %279 = arith.mulf %4, %278 : vector<1x128xf32>
    %280 = arith.addf %259, %279 : vector<1x128xf32>
    %281 = arith.mulf %260, %8 : vector<1x128xf32>
    %282 = arith.subf %260, %281 : vector<1x128xf32>
    %cst_77 = arith.constant 3.000000e+01 : f32
    %283 = vector.broadcast %cst_77 : f32 to vector<1x128xf32>
    %284 = arith.cmpf oge, %276, %283 : vector<1x128xf32>
    %cst_78 = arith.constant 3.000000e+01 : f32
    %285 = vector.broadcast %cst_78 : f32 to vector<1x128xf32>
    %286 = arith.subf %276, %285 : vector<1x128xf32>
    %287 = arith.negf %286 : vector<1x128xf32>
    %288 = math.exp %287 : vector<1x128xf32>
    %cst_79 = arith.constant 1.000000e+00 : f32
    %289 = vector.broadcast %cst_79 : f32 to vector<1x128xf32>
    %290 = arith.addf %289, %288 : vector<1x128xf32>
    %291 = arith.divf %289, %290 : vector<1x128xf32>
    %292 = arith.select %284, %6, %276 : vector<1x128xi1>, vector<1x128xf32>
    %293 = arith.select %284, %7, %280 : vector<1x128xi1>, vector<1x128xf32>
    %cst_80 = arith.constant 1.000000e+00 : f32
    %294 = vector.broadcast %cst_80 : f32 to vector<1x128xf32>
    %295 = arith.select %284, %294, %282 : vector<1x128xi1>, vector<1x128xf32>
    %c8_i32_81 = arith.constant 8 : i32
    %296 = arith.muli %arg0, %c8_i32_81 : i32
    %c6_i32 = arith.constant 6 : i32
    %297 = arith.addi %296, %c6_i32 : i32
    %c12_i32_82 = arith.constant 12 : i32
    %298 = arith.cmpi slt, %297, %c12_i32_82 : i32
    %299 = arith.select %298, %292, %258 : vector<1x128xf32>
    %300 = arith.select %298, %293, %259 : vector<1x128xf32>
    %301 = arith.select %298, %295, %260 : vector<1x128xf32>
    %cst_83 = arith.constant dense<0.000000e+00> : vector<1x128xf32>
    %302 = tpu.matmul %301, %13, %cst_83 {dimension_numbers = #tpu.dot_dimension_numbers<[1], [0], [0], [1], [0, 0, 1, 1], [], []>} : vector<1x128xf32>, vector<128x128xf32>, vector<1x128xf32> -> vector<1x128xf32>
    %303 = vector.extract_strided_slice %14 {offsets = [7, 0], sizes = [1, 128], strides = [1, 1]} : vector<8x128xf32> to vector<1x128xf32>
    %cst_84 = arith.constant 4.000000e-02 : f32
    %304 = vector.broadcast %cst_84 : f32 to vector<1x128xf32>
    %305 = arith.mulf %304, %299 : vector<1x128xf32>
    %306 = arith.mulf %305, %299 : vector<1x128xf32>
    %cst_85 = arith.constant 5.000000e+00 : f32
    %307 = vector.broadcast %cst_85 : f32 to vector<1x128xf32>
    %308 = arith.mulf %307, %299 : vector<1x128xf32>
    %309 = arith.addf %306, %308 : vector<1x128xf32>
    %cst_86 = arith.constant 1.400000e+02 : f32
    %310 = vector.broadcast %cst_86 : f32 to vector<1x128xf32>
    %311 = arith.addf %309, %310 : vector<1x128xf32>
    %312 = arith.subf %311, %300 : vector<1x128xf32>
    %313 = arith.addf %312, %302 : vector<1x128xf32>
    %314 = arith.addf %313, %303 : vector<1x128xf32>
    %cst_87 = arith.constant 1.000000e-01 : f32
    %315 = vector.broadcast %cst_87 : f32 to vector<1x128xf32>
    %316 = arith.addf %314, %315 : vector<1x128xf32>
    %317 = arith.addf %299, %316 : vector<1x128xf32>
    %318 = arith.mulf %5, %299 : vector<1x128xf32>
    %319 = arith.subf %318, %300 : vector<1x128xf32>
    %320 = arith.mulf %4, %319 : vector<1x128xf32>
    %321 = arith.addf %300, %320 : vector<1x128xf32>
    %322 = arith.mulf %301, %8 : vector<1x128xf32>
    %323 = arith.subf %301, %322 : vector<1x128xf32>
    %cst_88 = arith.constant 3.000000e+01 : f32
    %324 = vector.broadcast %cst_88 : f32 to vector<1x128xf32>
    %325 = arith.cmpf oge, %317, %324 : vector<1x128xf32>
    %cst_89 = arith.constant 3.000000e+01 : f32
    %326 = vector.broadcast %cst_89 : f32 to vector<1x128xf32>
    %327 = arith.subf %317, %326 : vector<1x128xf32>
    %328 = arith.negf %327 : vector<1x128xf32>
    %329 = math.exp %328 : vector<1x128xf32>
    %cst_90 = arith.constant 1.000000e+00 : f32
    %330 = vector.broadcast %cst_90 : f32 to vector<1x128xf32>
    %331 = arith.addf %330, %329 : vector<1x128xf32>
    %332 = arith.divf %330, %331 : vector<1x128xf32>
    %333 = arith.select %325, %6, %317 : vector<1x128xi1>, vector<1x128xf32>
    %334 = arith.select %325, %7, %321 : vector<1x128xi1>, vector<1x128xf32>
    %cst_91 = arith.constant 1.000000e+00 : f32
    %335 = vector.broadcast %cst_91 : f32 to vector<1x128xf32>
    %336 = arith.select %325, %335, %323 : vector<1x128xi1>, vector<1x128xf32>
    %c8_i32_92 = arith.constant 8 : i32
    %337 = arith.muli %arg0, %c8_i32_92 : i32
    %c7_i32 = arith.constant 7 : i32
    %338 = arith.addi %337, %c7_i32 : i32
    %c12_i32_93 = arith.constant 12 : i32
    %339 = arith.cmpi slt, %338, %c12_i32_93 : i32
    %340 = arith.select %339, %333, %299 : vector<1x128xf32>
    %341 = arith.select %339, %334, %300 : vector<1x128xf32>
    %342 = arith.select %339, %336, %301 : vector<1x128xf32>
    %343 = tpu.concatenate %46, %87, %128, %169, %210, %251, %292, %333 in 0 : vector<1x128xf32>, vector<1x128xf32>, vector<1x128xf32>, vector<1x128xf32>, vector<1x128xf32>, vector<1x128xf32>, vector<1x128xf32>, vector<1x128xf32> -> vector<8x128xf32>
    %c0_94 = arith.constant 0 : index
    %c0_95 = arith.constant 0 : index
    %344 = vector.load %arg4[%c0_94, %c0_95] : memref<8x128xf32, #tpu.memory_space<vmem>>, vector<8x128xf32>
    tpu.vector_store %arg4[%c0_94, %c0_95], %343 {strides = array<i32>} : memref<8x128xf32, #tpu.memory_space<vmem>>, vector<8x128xf32>,
    %345 = tpu.concatenate %45, %86, %127, %168, %209, %250, %291, %332 in 0 : vector<1x128xf32>, vector<1x128xf32>, vector<1x128xf32>, vector<1x128xf32>, vector<1x128xf32>, vector<1x128xf32>, vector<1x128xf32>, vector<1x128xf32> -> vector<8x128xf32>
    %c0_96 = arith.constant 0 : index
    %c0_97 = arith.constant 0 : index
    %346 = vector.load %arg5[%c0_96, %c0_97] : memref<8x128xf32, #tpu.memory_space<vmem>>, vector<8x128xf32>
    tpu.vector_store %arg5[%c0_96, %c0_97], %345 {strides = array<i32>} : memref<8x128xf32, #tpu.memory_space<vmem>>, vector<8x128xf32>,
    %347 = tpu.concatenate %340, %341, %342 in 0 : vector<1x128xf32>, vector<1x128xf32>, vector<1x128xf32> -> vector<3x128xf32>
    %c0_98 = arith.constant 0 : index
    %c0_99 = arith.constant 0 : index
    %348 = vector.load %arg6[%c0_98, %c0_99] : memref<3x128xf32, #tpu.memory_space<vmem>>, vector<3x128xf32>
    tpu.vector_store %arg6[%c0_98, %c0_99], %347 {strides = array<i32>} : memref<3x128xf32, #tpu.memory_space<vmem>>, vector<3x128xf32>,
    return
  }
  func.func @transform_0(%arg0: i32) -> (i32, i32) {
    %c0_i32 = arith.constant 0 : i32
    %c0_i32_0 = arith.constant 0 : i32
    %c0_i32_1 = arith.constant 0 : i32
    return %c0_i32, %c0_i32_0 : i32, i32
  }
  func.func @transform_2(%arg0: i32) -> (i32, i32) {
    %c0_i32 = arith.constant 0 : i32
    %c0_i32_0 = arith.constant 0 : i32
    return %arg0, %c0_i32 : i32, i32
  }
  func.func @transform_3(%arg0: i32) -> (i32, i32) {
    %c0_i32 = arith.constant 0 : i32
    %c0_i32_0 = arith.constant 0 : i32
    return %arg0, %c0_i32 : i32, i32
  }
  func.func @transform_4(%arg0: i32) -> (i32, i32) {
    %c0_i32 = arith.constant 0 : i32
    %c0_i32_0 = arith.constant 0 : i32
    return %arg0, %c0_i32 : i32, i32
  }
  func.func @transform_5(%arg0: i32) -> (i32, i32) {
    %c0_i32 = arith.constant 0 : i32
    %c0_i32_0 = arith.constant 0 : i32
    %c0_i32_1 = arith.constant 0 : i32
    return %c0_i32, %c0_i32_0 : i32, i32
  }
}

</mosaic_0001>

<bundles_post_ra>
// kernel: izhikevich_run.1
= control target key start
LH: loop header
LB: loop body
LE: loop exit
PB: predicated region body
PF: predicated region fallthrough
CT: control target
= control target key end

     0   :  { %11 = vsyncpa [#allocation4], 0  ;;  %s2899_s0 = inlined_call_operand.vmem [shape: f32[8,128], index: 0, kind: input, shape index: {}]   ;;  %s2900_s1 = inlined_call_operand.vmem [shape: f32[128,128], index: 1, kind: input, shape index: {}]   ;;  %s2901_s2 = inlined_call_operand.vmem [shape: f32[16,128], index: 2, kind: input, shape index: {}]   ;;  %s2902_s3 = inlined_call_operand.hbm [shape: f32[16,128], index: 3, kind: output, shape index: {0}]   ;;  %s2903_s4 = inlined_call_operand.hbm [shape: f32[16,128], index: 4, kind: output, shape index: {1}]   ;;  %s2904_s5 = inlined_call_operand.vmem [shape: f32[3,128], index: 5, kind: output, shape index: {2}]  }
   0x1   :  { %13 = vsyncpa [#allocation4 + $0x1], 0 }
   0x2   :  { %14 = vsyncpa [#allocation6], 0 }
   0x3   :  { %16 = vsyncpa [#allocation6 + $0x1], 0  ;;  %s2307_s18 = smov 0   ;;  %s2309_s19 = smov 0  }
   0x4   :  { %s2311_s20 = smov 0   ;;  %s2313_s21 = smov 0  }
   0x5 LB: > { %s2328_s22 = sadd.s32 4294967295, %s2270_s21   ;;  %s1456_s23 = sadd.s32 4294967294, %s2270_s21   ;;  %s2270_s21 = sphi %s2313_s21, %s2913_s21   ;;  %s2266_s20 = sphi %s2311_s20, %s2912_s20   ;;  %s2262_s19 = sphi %s2309_s19, %s2911_s19   ;;  %s2258_s18 = sphi %s2307_s18, %s2910_s18  }
   0x6   : > { %s2332_s24 = sadd.s32 1, %s2270_s21   ;;  %s76_s25 = sadd.s32 1, %s2266_s20 }
   0x7   : > { %s73_s26 = ssub.s32 %s2270_s21, %s2332_s24  ;;  %p86_p0 = scmp.ne.s32.totalorder %s2266_s20, %s2262_s19 }
   0x8   : > { %p74_p1 = scmp.eq.s32.totalorder %s73_s26, 0  ;;  %p87_p2 = scmp.eq.s32.totalorder %s2328_s22, 1 }
   0x9   : > { %p92_p3 = scmp.ne.s32.totalorder %s2262_s19, %s2258_s18  ;;  %p93_p4 = scmp.eq.s32.totalorder %s1456_s23, 1 }
   0xa   : > { %s2343_s27 = scalar_select %p74_p1, %s2266_s20, %s76_s25  }
   0xb   : > { %p2345_p5 = por %p87_p2, %p86_p0  ;;  %p2349_p6 = por %p93_p4, %p92_p3 }
   0xc   : > { %p1459_p7 = scmp.ge.s32.totalorder %s2270_s21, 1  ;;  %p168_p8 = scmp.lt.s32.totalorder %s2270_s21, 3 }
   0xe   : > { %p169_p9 = pnand %p1459_p7, %p168_p8 }
   0xf   : > { %s2356_s30 = sand.u32 (!%p169_p9), 1, %s2262_s19   ;;  %p198_p10 = scmp.lt.s32.totalorder (!%p169_p9), %s2328_s22, 1  ;;  %v2362_v0 = vld [vmem:[%s2899_s0] sm:$0xff] (!%p169_p9) }
  0x10   : > { %172 = sbr.rel (%p169_p9) target bundleno = 1909 (0x775), region = 28  ;;  %s1460_s8 = sshll.u32 (!%p169_p9), %s2356_s30, 3 }
  0x11   : > { %s2371_s14 = scalar_lea.vmem (!%p169_p9), [#allocation3], %s1460_s8  ;;  %s2373_s15 = scalar_lea.vmem (!%p169_p9), [#allocation5], %s1460_s8 }
  0x12   : > { %p1463_p11 = scmp.ne.s32.totalorder (!%p169_p9), %s2328_s22, 0 }
  0x17   : > { %s199_s9 = scalar_select %p198_p10, %s2328_s22, 1 }
  0x18   : > { %206 = sbr.rel (%p1463_p11) target bundleno = 43 (0x2b), region = 32 }
  0x19   : > { %s1462_s10 = sshll.u32 %s199_s9, 3 }
  0x1a   : > { %s2369_s13 = scalar_lea.vmem %s2901_s2, %s1462_s10 }
  0x1f   : > { %v239_v1 = vld [vmem:[%s2900_s1] sm:$0xff]  ;;  %v241_v2 = vld [vmem:[%s2900_s1 + $0x8] sm:$0xff]  ;;  %v243_v3 = vld [vmem:[%s2900_s1 + $0x10] sm:$0xff] }
  0x20   : > { %240 = vst [vmem:[#allocation2] sm:$0xff] %v239_v1  ;;  %242 = vst [vmem:[#allocation2 + $0x8] sm:$0xff] %v241_v2  ;;  %v245_v4 = vld [vmem:[%s2900_s1 + $0x18] sm:$0xff]  ;;  %v247_v5 = vld [vmem:[%s2900_s1 + $0x20] sm:$0xff] }
  0x21   : > { %244 = vst [vmem:[#allocation2 + $0x10] sm:$0xff] %v243_v3  ;;  %v249_v6 = vld [vmem:[%s2900_s1 + $0x28] sm:$0xff]  ;;  %246 = vst [vmem:[#allocation2 + $0x18] sm:$0xff] %v245_v4  ;;  %v251_v7 = vld [vmem:[%s2900_s1 + $0x30] sm:$0xff] }
  0x22   : > { %248 = vst [vmem:[#allocation2 + $0x20] sm:$0xff] %v247_v5  ;;  %250 = vst [vmem:[#allocation2 + $0x28] sm:$0xff] %v249_v6  ;;  %v253_v8 = vld [vmem:[%s2900_s1 + $0x38] sm:$0xff]  ;;  %v255_v9 = vld [vmem:[%s2900_s1 + $0x40] sm:$0xff] }
  0x23   : > { %252 = vst [vmem:[#allocation2 + $0x30] sm:$0xff] %v251_v7  ;;  %254 = vst [vmem:[#allocation2 + $0x38] sm:$0xff] %v253_v8  ;;  %v257_v10 = vld [vmem:[%s2900_s1 + $0x48] sm:$0xff]  ;;  %v259_v11 = vld [vmem:[%s2900_s1 + $0x50] sm:$0xff] }
  0x24   : > { %256 = vst [vmem:[#allocation2 + $0x40] sm:$0xff] %v255_v9  ;;  %v261_v12 = vld [vmem:[%s2900_s1 + $0x58] sm:$0xff]  ;;  %258 = vst [vmem:[#allocation2 + $0x48] sm:$0xff] %v257_v10  ;;  %v263_v13 = vld [vmem:[%s2900_s1 + $0x60] sm:$0xff] }
  0x25   : > { %260 = vst [vmem:[#allocation2 + $0x50] sm:$0xff] %v259_v11  ;;  %262 = vst [vmem:[#allocation2 + $0x58] sm:$0xff] %v261_v12  ;;  %v265_v14 = vld [vmem:[%s2900_s1 + $0x68] sm:$0xff]  ;;  %v267_v15 = vld [vmem:[%s2900_s1 + $0x70] sm:$0xff] }
  0x26   : > { %264 = vst [vmem:[#allocation2 + $0x60] sm:$0xff] %v263_v13  ;;  %266 = vst [vmem:[#allocation2 + $0x68] sm:$0xff] %v265_v14  ;;  %v269_v16 = vld [vmem:[%s2900_s1 + $0x78] sm:$0xff] }
  0x27   : > { %268 = vst [vmem:[#allocation2 + $0x70] sm:$0xff] %v267_v15  ;;  %270 = vst [vmem:[#allocation2 + $0x78] sm:$0xff] %v269_v16 }
  0x28   : > { %278 = vsyncadd [#allocation7], 2048 }
  0x29   : > { %2246 = dma.done.wait [#allocation7], 2048 }
  0x2a   : > { %2247 = vsyncadd [#allocation7], 4294965248  ;;  %282 = vst [vmem:[%s2904_s5 - $0x5] sm:$0xe0] %v2362_v0 }
  0x2b PF: > { %v284_v17 = vld [vmem:[#allocation2] sm:$0xff]  ;;  %v285_v18 = vld [vmem:[#allocation2 + $0x8] sm:$0xff]  ;;  %v286_v19 = vld [vmem:[#allocation2 + $0x10] sm:$0xff]  ;;  %v2272_v20 = vmov 0.0|0.0   ;;  %vm2273_vm0 = vmmov 0   ;;  %v2274_v23 = vmov 0.0  }
  0x2c   : > { %1903 = vmatprep.subr.bf16.mxu0 %v2272_v20  ;;  %v2429_v21 = vpack.c.bf16 %v285_v18, %v284_v17  ;;  %v287_v22 = vld [vmem:[#allocation2 + $0x18] sm:$0xff]  ;;  %1655 = vmatprep.mubr.msk.f32.mxu0 %vm2273_vm0, %v2274_v23  ;;  %v288_v25 = vld [vmem:[#allocation2 + $0x20] sm:$0xff]  ;;  %v289_v26 = vld [vmem:[#allocation2 + $0x28] sm:$0xff]  ;;  %v2514_v55 = vrot.slane %v2362_v0, 2  ;;  %s2517_s16 = sshll.u32 %s2328_s22, 3  ;;  %v2530_v7 = vrot.slane %v2362_v0, 3 }
  0x2d   : > { %1927 = vmatprep.subr.bf16.mxu1 %v2272_v20  ;;  %1690 = vmatprep.mubr.msk.f32.mxu1 %vm2273_vm0, %v2274_v23  ;;  %v2437_v24 = vpack.c.bf16 %v287_v22, %v286_v19  ;;  %v2443_v27 = vpack.c.bf16 %v289_v26, %v288_v25  ;;  %v290_v28 = vld [vmem:[#allocation2 + $0x30] sm:$0xff]  ;;  %v291_v29 = vld [vmem:[#allocation2 + $0x38] sm:$0xff]  ;;  %v292_v31 = vld [vmem:[#allocation2 + $0x40] sm:$0xff]  ;;  %p423_p12 = scmp.lt.s32.totalorder %s2517_s16, 12  ;;  %vm1266_vm5 = vcmask 1040384   ;;  %s657_s26 = sadd.s32 2, %s2517_s16 }
  0x2e   : > { %1905 = vmatpush3.bf16.msra.mxu0 %v2429_v21  ;;  %1929 = vmatpush3.bf16.msra.mxu1 %v2429_v21  ;;  %v2449_v30 = vpack.c.bf16 %v291_v29, %v290_v28  ;;  %v293_v32 = vld [vmem:[#allocation2 + $0x48] sm:$0xff]  ;;  %v294_v34 = vld [vmem:[#allocation2 + $0x50] sm:$0xff]  ;;  %v295_v35 = vld [vmem:[#allocation2 + $0x58] sm:$0xff]  ;;  %p658_p0 = scmp.lt.s32.totalorder %s657_s26, 12  ;;  %vm1268_vm8 = vcmask 1041408   ;;  %s773_s7 = sadd.s32 3, %s2517_s16 }
  0x2f   : > { %1906 = vmatprep.subr.bf16.mxu0 %v2272_v20  ;;  %1930 = vmatprep.subr.bf16.mxu1 %v2272_v20  ;;  %v2455_v33 = vpack.c.bf16 %v293_v32, %v292_v31  ;;  %v2461_v36 = vpack.c.bf16 %v295_v35, %v294_v34  ;;  %v296_v37 = vld [vmem:[#allocation2 + $0x60] sm:$0xff]  ;;  %v297_v38 = vld [vmem:[#allocation2 + $0x68] sm:$0xff]  ;;  %v298_v40 = vld [vmem:[#allocation2 + $0x70] sm:$0xff]  ;;  %s424_s17 = scalar_select %p423_p12, 1, 0  ;;  %v2575_v35 = vrot.slane %v2362_v0, 4 }
  0x30   : > { %v2467_v39 = vpack.c.bf16 %v297_v38, %v296_v37  ;;  %v299_v41 = vld [vmem:[#allocation2 + $0x78] sm:$0xff]  ;;  %v2524_v60 = vld [vmem:[%s2369_s13] sm:$0xff]  ;;  %s541_s13 = sadd.s32 1, %s2517_s16  ;;  %p774_p1 = scmp.lt.s32.totalorder %s773_s7, 12  ;;  %vm1270_vm11 = vcmask 1042432   ;;  %vm1272_vm14 = vcmask 1043456  }
  0x31   : > { %v2473_v42 = vpack.c.bf16 %v299_v41, %v298_v40  ;;  %v2478_v43 = vld [vmem:[%s2904_s5] sm:$0x7]  ;;  %v425_v5 = vstv %s424_s17  ;;  %p2569_p13 = scmp.lt.s32.totalorder %s541_s13, 12  ;;  %v508_v34 = vrot.slane %v2524_v60, 1  ;;  %s889_s9 = sadd.s32 4, %s2517_s16 }
  0x32   : > { %1908 = vmatpush3.bf16.msra.mxu0 %v2437_v24  ;;  %1932 = vmatpush3.bf16.msra.mxu1 %v2437_v24  ;;  %v302_v44 = vrot.slane %v2478_v43, 2  ;;  %v386_v45 = vrot.slane %v2478_v43, 7  ;;  %v374_v46 = vmul.f32 0.04, %v2478_v43  ;;  %v376_v49 = vmul.f32 5.0, %v2478_v43  ;;  %p890_p2 = scmp.lt.s32.totalorder %s889_s9, 12 }
  0x33   : > { %1909 = vmatprep.subr.bf16.mxu0 %v2272_v20  ;;  %1933 = vmatprep.subr.bf16.mxu1 %v2272_v20  ;;  %v379_v54 = vrot.slane %v2478_v43, 1  ;;  %v401_v58 = vmul.f32 %v2514_v55, %v2478_v43  ;;  %vm2533_vm1 = vcmp.eq.s32.totalorder %v425_v5, 1  ;;  %s543_s25 = scalar_select %p2569_p13, 1, 0 }
  0x34   : > { %v388_v47 = vmul.f32 %v386_v45, %v2362_v0  ;;  %v375_v48 = vmul.f32 %v374_v46, %v2478_v43  ;;  %s659_s6 = scalar_select %p658_p0, 1, 0 }
  0x35   : > { %v402_v1 = vsub.f32 %v2478_v43, %v401_v58  ;;  %s775_s8 = scalar_select %p774_p1, 1, 0 }
  0x36   : > { %1911 = vmatpush3.bf16.msra.mxu0 %v2443_v27  ;;  %1935 = vmatpush3.bf16.msra.mxu1 %v2443_v27  ;;  %v389_v50 = vsub.f32 %v388_v47, %v2478_v43  ;;  %v377_v51 = vadd.f32 %v376_v49, %v375_v48  ;;  %v544_v48 = vstv %s543_s25  ;;  %s891_s10 = scalar_select %p890_p2, 1, 0 }
  0x37   : > { %1912 = vmatprep.subr.bf16.mxu0 %v2272_v20  ;;  %1936 = vmatprep.subr.bf16.mxu1 %v2272_v20  ;;  %v419_v6 = vrot.slane %v402_v1, 2  ;;  %vm545_vm3 = vcmp.eq.s32.totalorder %v544_v48, 1  ;;  %s1005_s11 = sadd.s32 5, %s2517_s16  ;;  %s1121_s17 = sadd.s32 6, %s2517_s16 }
  0x38   : > { %v391_v52 = vrot.slane %v389_v50, 1  ;;  %v378_v53 = vadd.f32 140.0, %v377_v51  ;;  %p1006_p3 = scmp.lt.s32.totalorder %s1005_s11, 12  ;;  %p1122_p4 = scmp.lt.s32.totalorder %s1121_s17, 12 }
  0x39   : > { %s1237_s23 = sadd.s32 7, %s2517_s16  ;;  %s1483_s16 = sshll.u32 %s2328_s22, 7 }
  0x3a   : > { %1914 = vmatpush3.bf16.msra.mxu0 %v2449_v30  ;;  %1938 = vmatpush3.bf16.msra.mxu1 %v2449_v30  ;;  %v393_v56 = vmul.f32 %v391_v52, %v2362_v0  ;;  %v381_v57 = vsub.f32 %v378_v53, %v379_v54  ;;  %s1007_s12 = scalar_select %p1006_p3, 1, 0 }
  0x3b   : > { %1915 = vmatprep.subr.bf16.mxu0 %v2272_v20  ;;  %1939 = vmatprep.subr.bf16.mxu1 %v2272_v20  ;;  %s1123_s13 = scalar_select %p1122_p4, 1, 0 }
  0x3c   : > { %v395_v59 = vrot.slane %v393_v56, 7  ;;  %p1238_p7 = scmp.lt.s32.totalorder %s1237_s23, 12  ;;  %s1338_s26 = sshll.u32 %s2371_s14, 4  ;;  %s2816_s26 = int_to_ptr.vmem [resolvable:$true] %s1338_s26 }
  0x3d   : > { %s1320_s11 = scalar_lea.sflag [#allocation4], %s2356_s30  ;;  %s2275_s17 = smov [#allocation3]  }
  0x3e   : > { %1917 = vmatpush3.bf16.msra.mxu0 %v2455_v33  ;;  %1941 = vmatpush3.bf16.msra.mxu1 %v2455_v33  ;;  %v397_v2 = vadd.f32 %v395_v59, %v2478_v43  ;;  %s1239_s25 = scalar_select %p1238_p7, 1, 0 }
  0x3f   : > { %1918 = vmatprep.subr.bf16.mxu0 %v2272_v20  ;;  %1942 = vmatprep.subr.bf16.mxu1 %v2272_v20 }
  0x40   : > { %v415_v8 = vrot.slane %v397_v2, 1 }
  0x42   : > { %1920 = vmatpush3.bf16.msra.mxu0 %v2461_v36  ;;  %1944 = vmatpush3.bf16.msra.mxu1 %v2461_v36 }
  0x43   : > { %1921 = vmatprep.subr.bf16.mxu0 %v2272_v20  ;;  %1945 = vmatprep.subr.bf16.mxu1 %v2272_v20 }
  0x46   : > { %1923 = vmatpush3.bf16.msra.mxu0 %v2467_v39  ;;  %1947 = vmatpush3.bf16.msra.mxu1 %v2467_v39 }
  0x47   : > { %1924 = vmatprep.subr.bf16.mxu0 %v2272_v20  ;;  %1948 = vmatprep.subr.bf16.mxu1 %v2272_v20 }
  0x4a   : > { %1926 = vmatpush3.bf16.msra.mxu0 %v2473_v42  ;;  %1950 = vmatpush3.bf16.msra.mxu1 %v2473_v42 }
  0x4b   : > { %1951 = vmatprep.subr.bf16.mxu0 %v2272_v20  ;;  %1975 = vmatprep.subr.bf16.mxu1 %v2272_v20 }
  0x4d   : > { %1656 = vmatmul.mubr.f32.vlgmr.msra.gmra.mrb[0].mxu0 %v302_v44 }
  0x4e   : > { %1953 = vmatpush3.bf16.msra.mxu0 %v2429_v21  ;;  %1725 = vmatprep.mubr.msk.f32.mxu0 %vm2273_vm0, %v2274_v23 }
  0x4f   : > { %1954 = vmatprep.subr.bf16.mxu0 %v2272_v20 }
  0x52   : > { %1956 = vmatpush3.bf16.msra.mxu0 %v2437_v24 }
  0x53   : > { %1957 = vmatprep.subr.bf16.mxu0 %v2272_v20 }
  0x56   : > { %1959 = vmatpush3.bf16.msra.mxu0 %v2443_v27 }
  0x57   : > { %1960 = vmatprep.subr.bf16.mxu0 %v2272_v20 }
  0x5a   : > { %1962 = vmatpush3.bf16.msra.mxu0 %v2449_v30 }
  0x5b   : > { %1963 = vmatprep.subr.bf16.mxu0 %v2272_v20 }
  0x5e   : > { %1965 = vmatpush3.bf16.msra.mxu0 %v2455_v33 }
  0x5f   : > { %1966 = vmatprep.subr.bf16.mxu0 %v2272_v20 }
  0x62   : > { %1968 = vmatpush3.bf16.msra.mxu0 %v2461_v36 }
  0x63   : > { %1969 = vmatprep.subr.bf16.mxu0 %v2272_v20 }
  0x66   : > { %1971 = vmatpush3.bf16.msra.mxu0 %v2467_v39 }
  0x67   : > { %1972 = vmatprep.subr.bf16.mxu0 %v2272_v20 }
  0x6a   : > { %1974 = vmatpush3.bf16.msra.mxu0 %v2473_v42 }
  0x6b   : > { %1999 = vmatprep.subr.bf16.mxu0 %v2272_v20 }
 0x120   : > { %v370_v61 = vpop.f32.mrb[0].mxu0 }
 0x121   : > { %v382_v62 = vadd.f32 %v381_v57, %v370_v61  ;;  %v1657_v63 = vpop.f32.mrb[1].mxu0 }
 0x123   : > { %v383_v3 = vadd.f32 %v382_v62, %v2524_v60 }
 0x125   : > { %v384_v4 = vadd.f32 0.1, %v383_v3 }
 0x127   : > { %v385_v9 = vadd.f32 %v384_v4, %v2478_v43 }
 0x129   : > { %vm403_vm2 = vcmp.ge.f32.partialorder %v385_v9, 30.0 }
 0x12a   : > { %v2538_v11 = vsel %vm403_vm2, %v2514_v55, %v385_v9  ;;  %v421_v12 = vsel %vm403_vm2, 1.0, %v419_v6  ;;  %v417_v13 = vsel %vm403_vm2, %v2530_v7, %v415_v8 }
 0x12b   : > { %v429_v14 = vsel %vm2533_vm1, %v421_v12, %v302_v44  ;;  %v428_v15 = vsel %vm2533_vm1, %v417_v13, %v379_v54  ;;  %v427_v16 = vsel %vm2533_vm1, %v2538_v11, %v2478_v43  ;;  %v1464_v43 = vadd.f32 -30.0, %v385_v9 }
 0x12c   : > { %1691 = vmatmul.mubr.f32.vlgmr.msra.gmra.mrb[0].mxu1 %v429_v14  ;;  %v500_v17 = vmul.f32 0.04, %v427_v16  ;;  %v514_v19 = vrot.slane %v427_v16, 7  ;;  %v502_v22 = vmul.f32 5.0, %v427_v16  ;;  %v518_v28 = vrot.slane %v428_v15, 7 }
 0x12d   : > { %1977 = vmatpush3.bf16.msra.mxu1 %v2429_v21  ;;  %1760 = vmatprep.mubr.msk.f32.mxu1 %vm2273_vm0, %v2274_v23  ;;  %v528_v45 = vmul.f32 %v2575_v35, %v429_v14  ;;  %v1465_v49 = vmul.f32 -1.442695, %v1464_v43  ;;  %vm1274_vm1 = vcmask 1044480  }
 0x12e   : > { %1978 = vmatprep.subr.bf16.mxu1 %v2272_v20  ;;  %v501_v18 = vmul.f32 %v500_v17, %v427_v16  ;;  %v516_v26 = vmul.f32 %v514_v19, %v2362_v0 }
 0x12f   : > { %v529_v51 = vsub.f32 %v429_v14, %v528_v45  ;;  %2142 = vpow2.f32 %v1465_v49 }
 0x130   : > { %v503_v25 = vadd.f32 %v502_v22, %v501_v18  ;;  %v520_v31 = vsub.f32 %v516_v26, %v518_v28  ;;  %v626_v22 = vrot.slane %v2524_v60, 2 }
 0x131   : > { %1980 = vmatpush3.bf16.msra.mxu1 %v2437_v24 }
 0x132   : > { %1981 = vmatprep.subr.bf16.mxu1 %v2272_v20  ;;  %v504_v29 = vadd.f32 140.0, %v503_v25  ;;  %v522_v38 = vrot.slane %v520_v31, 1 }
 0x134   : > { %v505_v32 = vsub.f32 %v504_v29, %v428_v15  ;;  %v524_v46 = vmul.f32 %v522_v38, %v2362_v0  ;;  %v660_v38 = vstv %s659_s6 }
 0x135   : > { %1983 = vmatpush3.bf16.msra.mxu1 %v2443_v27  ;;  %vm661_vm6 = vcmp.eq.s32.totalorder %v660_v38, 1 }
 0x136   : > { %1984 = vmatprep.subr.bf16.mxu1 %v2272_v20  ;;  %v525_v52 = vadd.f32 %v524_v46, %v428_v15 }
 0x139   : > { %1986 = vmatpush3.bf16.msra.mxu1 %v2449_v30  ;;  %v2143_v63 = vpop.eup %2142 }
 0x13a   : > { %1987 = vmatprep.subr.bf16.mxu1 %v2272_v20  ;;  %v408_v2 = vadd.f32 1.0, %v2143_v63 }
 0x13d   : > { %1989 = vmatpush3.bf16.msra.mxu1 %v2455_v33 }
 0x13e   : > { %1990 = vmatprep.subr.bf16.mxu1 %v2272_v20 }
 0x141   : > { %1992 = vmatpush3.bf16.msra.mxu1 %v2461_v36 }
 0x142   : > { %1993 = vmatprep.subr.bf16.mxu1 %v2272_v20 }
 0x145   : > { %1995 = vmatpush3.bf16.msra.mxu1 %v2467_v39 }
 0x146   : > { %1996 = vmatprep.subr.bf16.mxu1 %v2272_v20 }
 0x149   : > { %1998 = vmatpush3.bf16.msra.mxu1 %v2473_v42 }
 0x14a   : > { %2023 = vmatprep.subr.bf16.mxu1 %v2272_v20 }
 0x1ff   : > { %v496_v37 = vpop.f32.mrb[0].mxu1 }
 0x200   : > { %v506_v40 = vadd.f32 %v505_v32, %v496_v37  ;;  %v1692_v41 = vpop.f32.mrb[1].mxu1 }
 0x202   : > { %v510_v44 = vadd.f32 %v508_v34, %v506_v40 }
 0x204   : > { %v511_v47 = vadd.f32 0.1, %v510_v44 }
 0x206   : > { %v512_v50 = vadd.f32 %v511_v47, %v427_v16 }
 0x208   : > { %v1467_v53 = vadd.f32 -30.0, %v512_v50  ;;  %vm530_vm4 = vcmp.ge.f32.partialorder %v512_v50, 30.0 }
 0x209   : > { %v2582_v54 = vsel %vm530_vm4, %v2514_v55, %v512_v50  ;;  %v540_v56 = vsel %vm530_vm4, 1.0, %v529_v51  ;;  %v539_v57 = vsel %vm530_vm4, %v2530_v7, %v525_v52  ;;  %vm1276_vm4 = vcmask 1045504  }
 0x20a   : > { %v1468_v58 = vmul.f32 -1.442695, %v1467_v53  ;;  %v2586_v59 = vsel %vm545_vm3, %v2582_v54, %v427_v16  ;;  %v2588_v61 = vsel %vm545_vm3, %v540_v56, %v429_v14  ;;  %v2591_v62 = vsel %vm545_vm3, %v539_v57, %v428_v15 }
 0x20b   : > { %1726 = vmatmul.mubr.f32.vlgmr.msra.gmra.mrb[2].mxu0 %v2588_v61  ;;  %v619_v9 = vmul.f32 0.04, %v2586_v59  ;;  %v632_v12 = vrot.slane %v2586_v59, 7  ;;  %v621_v13 = vmul.f32 5.0, %v2586_v59  ;;  %v636_v16 = vrot.slane %v2591_v62, 7 }
 0x20c   : > { %2144 = vpow2.f32 %v1468_v58  ;;  %2001 = vmatpush3.bf16.msra.mxu0 %v2429_v21  ;;  %1795 = vmatprep.mubr.msk.f32.mxu0 %vm2273_vm0, %v2274_v23  ;;  %v644_v32 = vmul.f32 %v2588_v61, %v2575_v35  ;;  %v1246_v43 = vrot.slane %v2582_v54, 7 }
 0x20d   : > { %2002 = vmatprep.subr.bf16.mxu0 %v2272_v20  ;;  %v620_v10 = vmul.f32 %v619_v9, %v2586_v59  ;;  %v634_v15 = vmul.f32 %v632_v12, %v2362_v0 }
 0x20e   : > { %v645_v41 = vsub.f32 %v2588_v61, %v644_v32  ;;  %v1267_v53 = vsel %vm1266_vm5, %v2538_v11, %v1246_v43 }
 0x20f   : > { %v622_v14 = vadd.f32 %v621_v13, %v620_v10  ;;  %v638_v18 = vsub.f32 %v634_v15, %v636_v16  ;;  %v742_v10 = vrot.slane %v2524_v60, 3 }
 0x210   : > { %2004 = vmatpush3.bf16.msra.mxu0 %v2437_v24 }
 0x211   : > { %2005 = vmatprep.subr.bf16.mxu0 %v2272_v20  ;;  %v623_v17 = vadd.f32 140.0, %v622_v14  ;;  %v640_v26 = vrot.slane %v638_v18, 1 }
 0x213   : > { %v624_v19 = vsub.f32 %v623_v17, %v2591_v62  ;;  %v642_v34 = vmul.f32 %v640_v26, %v2362_v0 }
 0x214   : > { %2007 = vmatpush3.bf16.msra.mxu0 %v2443_v27 }
 0x215   : > { %2008 = vmatprep.subr.bf16.mxu0 %v2272_v20  ;;  %v643_v44 = vadd.f32 %v642_v34, %v2591_v62 }
 0x216   : > { %v2145_v1 = vpop.eup %2144 }
 0x217   : > { %v535_v3 = vadd.f32 1.0, %v2145_v1 }
 0x218   : > { %2010 = vmatpush3.bf16.msra.mxu0 %v2449_v30 }
 0x219   : > { %2146 = vrcp.f32 %v535_v3  ;;  %2011 = vmatprep.subr.bf16.mxu0 %v2272_v20 }
 0x21a   : > { %2148 = vrcp.f32 %v408_v2 }
 0x21c   : > { %2013 = vmatpush3.bf16.msra.mxu0 %v2455_v33 }
 0x21d   : > { %2014 = vmatprep.subr.bf16.mxu0 %v2272_v20 }
 0x220   : > { %2016 = vmatpush3.bf16.msra.mxu0 %v2461_v36 }
 0x221   : > { %2017 = vmatprep.subr.bf16.mxu0 %v2272_v20 }
 0x223   : > { %v2147_v4 = vpop.eup %2146 }
 0x224   : > { %v1282_v5 = vrot.slane %v2147_v4, 7  ;;  %2019 = vmatpush3.bf16.msra.mxu0 %v2467_v39  ;;  %v2149_v6 = vpop.eup %2148 }
 0x225   : > { %2020 = vmatprep.subr.bf16.mxu0 %v2272_v20 }
 0x226   : > { %v2610_v8 = vsel %vm1266_vm5, %v2149_v6, %v1282_v5 }
 0x228   : > { %2022 = vmatpush3.bf16.msra.mxu0 %v2473_v42 }
 0x229   : > { %2047 = vmatprep.subr.bf16.mxu0 %v2272_v20 }
 0x2de   : > { %v615_v25 = vpop.f32.mrb[2].mxu0 }
 0x2df   : > { %v625_v28 = vadd.f32 %v624_v19, %v615_v25  ;;  %v1727_v29 = vpop.f32.mrb[3].mxu0 }
 0x2e1   : > { %v628_v31 = vadd.f32 %v626_v22, %v625_v28  ;;  %v776_v22 = vstv %s775_s8  ;;  %s2814_s8 = scalar_lea.hbm %s2902_s3, %s1483_s16 }
 0x2e2   : > { %vm777_vm9 = vcmp.eq.s32.totalorder %v776_v22, 1 }
 0x2e3   : > { %v629_v37 = vadd.f32 0.1, %v628_v31 }
 0x2e5   : > { %v630_v40 = vadd.f32 %v629_v37, %v2586_v59 }
 0x2e7   : > { %v1469_v45 = vadd.f32 -30.0, %v630_v40  ;;  %vm646_vm7 = vcmp.ge.f32.partialorder %v630_v40, 30.0 }
 0x2e8   : > { %v654_v46 = vsel %vm646_vm7, %v2514_v55, %v630_v40  ;;  %v656_v47 = vsel %vm646_vm7, 1.0, %v645_v41  ;;  %v655_v48 = vsel %vm646_vm7, %v2530_v7, %v643_v44 }
 0x2e9   : > { %v1470_v49 = vmul.f32 -1.442695, %v1469_v45  ;;  %v2633_v50 = vsel %vm661_vm6, %v654_v46, %v2586_v59  ;;  %v2636_v51 = vsel %vm661_vm6, %v656_v47, %v2588_v61  ;;  %v1249_v52 = vrot.slane %v654_v46, 6 }
 0x2ea   : > { %1761 = vmatmul.mubr.f32.vlgmr.msra.gmra.mrb[2].mxu1 %v2636_v51  ;;  %v2642_v54 = vsel %vm661_vm6, %v655_v48, %v2591_v62  ;;  %v735_v62 = vmul.f32 0.04, %v2633_v50  ;;  %v748_v1 = vrot.slane %v2633_v50, 7  ;;  %v737_v2 = vmul.f32 5.0, %v2633_v50 }
 0x2eb   : > { %2150 = vpow2.f32 %v1470_v49  ;;  %2025 = vmatpush3.bf16.msra.mxu1 %v2429_v21  ;;  %1830 = vmatprep.mubr.msk.f32.mxu1 %vm2273_vm0, %v2274_v23  ;;  %v2648_v56 = vsel %vm1268_vm8, %v1267_v53, %v1249_v52  ;;  %v752_v5 = vrot.slane %v2642_v54, 7  ;;  %v760_v17 = vmul.f32 %v2636_v51, %v2575_v35 }
 0x2ec   : > { %2026 = vmatprep.subr.bf16.mxu1 %v2272_v20  ;;  %v736_v63 = vmul.f32 %v735_v62, %v2633_v50  ;;  %v750_v4 = vmul.f32 %v748_v1, %v2362_v0 }
 0x2ed   : > { %v761_v26 = vsub.f32 %v2636_v51, %v760_v17 }
 0x2ee   : > { %v738_v3 = vadd.f32 %v737_v2, %v736_v63 }
 0x2ef   : > { %2028 = vmatpush3.bf16.msra.mxu1 %v2437_v24 }
 0x2f0   : > { %2029 = vmatprep.subr.bf16.mxu1 %v2272_v20  ;;  %v739_v6 = vadd.f32 140.0, %v738_v3 }
 0x2f2   : > { %v740_v9 = vsub.f32 %v739_v6, %v2642_v54 }
 0x2f3   : > { %2031 = vmatpush3.bf16.msra.mxu1 %v2443_v27 }
 0x2f4   : > { %2032 = vmatprep.subr.bf16.mxu1 %v2272_v20 }
 0x2f5   : > { %v2151_v11 = vpop.eup %2150 }
 0x2f6   : > { %v651_v57 = vadd.f32 1.0, %v2151_v11 }
 0x2f7   : > { %2034 = vmatpush3.bf16.msra.mxu1 %v2449_v30 }
 0x2f8   : > { %2152 = vrcp.f32 %v651_v57  ;;  %2035 = vmatprep.subr.bf16.mxu1 %v2272_v20 }
 0x2fb   : > { %2037 = vmatpush3.bf16.msra.mxu1 %v2455_v33 }
 0x2fc   : > { %2038 = vmatprep.subr.bf16.mxu1 %v2272_v20 }
 0x2ff   : > { %2040 = vmatpush3.bf16.msra.mxu1 %v2461_v36 }
 0x300   : > { %2041 = vmatprep.subr.bf16.mxu1 %v2272_v20 }
 0x302   : > { %v2153_v58 = vpop.eup %2152 }
 0x303   : > { %v1285_v59 = vrot.slane %v2153_v58, 6  ;;  %2043 = vmatpush3.bf16.msra.mxu1 %v2467_v39 }
 0x304   : > { %2044 = vmatprep.subr.bf16.mxu1 %v2272_v20 }
 0x305   : > { %v2665_v61 = vsel %vm1268_vm8, %v2610_v8, %v1285_v59  ;;  %v754_v8 = vsub.f32 %v750_v4, %v752_v5 }
 0x307   : > { %2046 = vmatpush3.bf16.msra.mxu1 %v2473_v42  ;;  %v756_v13 = vrot.slane %v754_v8, 1  ;;  %v892_v8 = vstv %s891_s10 }
 0x308   : > { %2071 = vmatprep.subr.bf16.mxu1 %v2272_v20  ;;  %vm893_vm12 = vcmp.eq.s32.totalorder %v892_v8, 1 }
 0x309   : > { %v758_v18 = vmul.f32 %v756_v13, %v2362_v0 }
 0x30b   : > { %v759_v28 = vadd.f32 %v758_v18, %v2642_v54 }
 0x3bd   : > { %v731_v12 = vpop.f32.mrb[2].mxu1 }
 0x3be   : > { %v741_v14 = vadd.f32 %v740_v9, %v731_v12  ;;  %v1762_v15 = vpop.f32.mrb[3].mxu1 }
 0x3c0   : > { %v744_v16 = vadd.f32 %v742_v10, %v741_v14 }
 0x3c2   : > { %v745_v19 = vadd.f32 0.1, %v744_v16 }
 0x3c4   : > { %v746_v25 = vadd.f32 %v745_v19, %v2633_v50 }
 0x3c6   : > { %v1471_v29 = vadd.f32 -30.0, %v746_v25  ;;  %vm762_vm10 = vcmp.ge.f32.partialorder %v746_v25, 30.0 }
 0x3c7   : > { %v770_v31 = vsel %vm762_vm10, %v2514_v55, %v746_v25  ;;  %v772_v32 = vsel %vm762_vm10, 1.0, %v761_v26  ;;  %v771_v34 = vsel %vm762_vm10, %v2530_v7, %v759_v28 }
 0x3c8   : > { %v1472_v37 = vmul.f32 -1.442695, %v1471_v29  ;;  %v2687_v38 = vsel %vm777_vm9, %v770_v31, %v2633_v50  ;;  %v2690_v40 = vsel %vm777_vm9, %v772_v32, %v2636_v51  ;;  %v1252_v41 = vrot.slane %v770_v31, 5 }
 0x3c9   : > { %1796 = vmatmul.mubr.f32.vlgmr.msra.gmra.mrb[4].mxu0 %v2690_v40  ;;  %v2694_v43 = vsel %vm777_vm9, %v771_v34, %v2642_v54  ;;  %v851_v50 = vmul.f32 0.04, %v2687_v38  ;;  %v864_v52 = vrot.slane %v2687_v38, 7  ;;  %v853_v53 = vmul.f32 5.0, %v2687_v38 }
 0x3ca   : > { %2154 = vpow2.f32 %v1472_v37  ;;  %2049 = vmatpush3.bf16.msra.mxu0 %v2429_v21  ;;  %1865 = vmatprep.mubr.msk.f32.mxu0 %vm2273_vm0, %v2274_v23  ;;  %v2701_v44 = vsel %vm1270_vm11, %v2648_v56, %v1252_v41  ;;  %v868_v11 = vrot.slane %v2694_v43, 7  ;;  %v876_v4 = vmul.f32 %v2690_v40, %v2575_v35 }
 0x3cb   : > { %2050 = vmatprep.subr.bf16.mxu0 %v2272_v20  ;;  %v852_v51 = vmul.f32 %v851_v50, %v2687_v38  ;;  %v866_v56 = vmul.f32 %v864_v52, %v2362_v0  ;;  %vm1278_vm9 = vcmask 1046528  }
 0x3cc   : > { %v877_v10 = vsub.f32 %v2690_v40, %v876_v4 }
 0x3cd   : > { %v854_v54 = vadd.f32 %v853_v53, %v852_v51  ;;  %v870_v58 = vsub.f32 %v866_v56, %v868_v11 }
 0x3ce   : > { %2052 = vmatpush3.bf16.msra.mxu0 %v2437_v24 }
 0x3cf   : > { %2053 = vmatprep.subr.bf16.mxu0 %v2272_v20  ;;  %v855_v57 = vadd.f32 140.0, %v854_v54  ;;  %v872_v63 = vrot.slane %v870_v58, 1 }
 0x3d1   : > { %v856_v59 = vsub.f32 %v855_v57, %v2694_v43  ;;  %v874_v5 = vmul.f32 %v872_v63, %v2362_v0 }
 0x3d2   : > { %2055 = vmatpush3.bf16.msra.mxu0 %v2443_v27 }
 0x3d3   : > { %2056 = vmatprep.subr.bf16.mxu0 %v2272_v20  ;;  %v875_v12 = vadd.f32 %v874_v5, %v2694_v43 }
 0x3d4   : > { %v2155_v45 = vpop.eup %2154 }
 0x3d5   : > { %v767_v46 = vadd.f32 1.0, %v2155_v45 }
 0x3d6   : > { %2058 = vmatpush3.bf16.msra.mxu0 %v2449_v30 }
 0x3d7   : > { %2156 = vrcp.f32 %v767_v46  ;;  %2059 = vmatprep.subr.bf16.mxu0 %v2272_v20 }
 0x3da   : > { %2061 = vmatpush3.bf16.msra.mxu0 %v2455_v33 }
 0x3db   : > { %2062 = vmatprep.subr.bf16.mxu0 %v2272_v20 }
 0x3de   : > { %2064 = vmatpush3.bf16.msra.mxu0 %v2461_v36 }
 0x3df   : > { %2065 = vmatprep.subr.bf16.mxu0 %v2272_v20 }
 0x3e1   : > { %v2157_v47 = vpop.eup %2156 }
 0x3e2   : > { %v1288_v48 = vrot.slane %v2157_v47, 5  ;;  %2067 = vmatpush3.bf16.msra.mxu0 %v2467_v39 }
 0x3e3   : > { %2068 = vmatprep.subr.bf16.mxu0 %v2272_v20 }
 0x3e4   : > { %v2718_v49 = vsel %vm1270_vm11, %v2665_v61, %v1288_v48  ;;  %v858_v61 = vrot.slane %v2524_v60, 4  ;;  %v1008_v48 = vstv %s1007_s12  ;;  %s2174_s12 = scalar_lea.vmem %s2816_s26, 128 }
 0x3e5   : > { %vm1009_vm15 = vcmp.eq.s32.totalorder %v1008_v48, 1  ;;  %p2175_p8 = scmp.ne.s32.totalorder %s2816_s26, %s2174_s12 }
 0x3e6   : > { %2070 = vmatpush3.bf16.msra.mxu0 %v2473_v42 }
 0x3e7   : > { %p2176_p9 = pnand %p2175_p8, %p2345_p5 }
 0x3e9   : > { %p2177_p10 = pneg %p2176_p9 }
 0x49c   : > { %v847_v62 = vpop.f32.mrb[4].mxu0 }
 0x49d   : > { %v857_v1 = vadd.f32 %v856_v59, %v847_v62  ;;  %v1797_v2 = vpop.f32.mrb[5].mxu0 }
 0x49f   : > { %v860_v3 = vadd.f32 %v858_v61, %v857_v1 }
 0x4a1   : > { %v861_v6 = vadd.f32 0.1, %v860_v3 }
 0x4a3   : > { %v862_v9 = vadd.f32 %v861_v6, %v2687_v38 }
 0x4a5   : > { %v1473_v13 = vadd.f32 -30.0, %v862_v9  ;;  %vm878_vm13 = vcmp.ge.f32.partialorder %v862_v9, 30.0 }
 0x4a6   : > { %v886_v14 = vsel %vm878_vm13, %v2514_v55, %v862_v9  ;;  %v888_v15 = vsel %vm878_vm13, 1.0, %v877_v10  ;;  %v887_v16 = vsel %vm878_vm13, %v2530_v7, %v875_v12 }
 0x4a7   : > { %v1474_v17 = vmul.f32 -1.442695, %v1473_v13  ;;  %v2739_v18 = vsel %vm893_vm12, %v886_v14, %v2687_v38  ;;  %v2742_v19 = vsel %vm893_vm12, %v888_v15, %v2690_v40  ;;  %v1255_v22 = vrot.slane %v886_v14, 4 }
 0x4a8   : > { %1831 = vmatmul.mubr.f32.vlgmr.msra.gmra.mrb[4].mxu1 %v2742_v19  ;;  %v2746_v25 = vsel %vm893_vm12, %v887_v16, %v2694_v43  ;;  %v992_v45 = vmul.f32 %v2742_v19, %v2575_v35 }
 0x4a9   : > { %2158 = vpow2.f32 %v1474_v17  ;;  %2073 = vmatpush3.bf16.msra.mxu1 %v2429_v21  ;;  %1900 = vmatprep.mubr.msk.f32.mxu1 %vm2273_vm0, %v2274_v23  ;;  %v1273_v26 = vsel %vm1272_vm14, %v2701_v44, %v1255_v22  ;;  %v1090_v17 = vrot.slane %v2524_v60, 6 }
 0x4aa   : > { %2074 = vmatprep.subr.bf16.mxu1 %v2272_v20  ;;  %v993_v50 = vsub.f32 %v2742_v19, %v992_v45 }
 0x4ad   : > { %2076 = vmatpush3.bf16.msra.mxu1 %v2437_v24 }
 0x4ae   : > { %2077 = vmatprep.subr.bf16.mxu1 %v2272_v20 }
 0x4b1   : > { %2079 = vmatpush3.bf16.msra.mxu1 %v2443_v27  ;;  %v967_v27 = vmul.f32 0.04, %v2739_v18 }
 0x4b2   : > { %2080 = vmatprep.subr.bf16.mxu1 %v2272_v20 }
 0x4b3   : > { %v2159_v28 = vpop.eup %2158 }
 0x4b4   : > { %v883_v29 = vadd.f32 1.0, %v2159_v28 }
 0x4b5   : > { %2082 = vmatpush3.bf16.msra.mxu1 %v2449_v30  ;;  %v968_v30 = vmul.f32 %v967_v27, %v2739_v18 }
 0x4b6   : > { %2160 = vrcp.f32 %v883_v29  ;;  %2083 = vmatprep.subr.bf16.mxu1 %v2272_v20 }
 0x4b9   : > { %2085 = vmatpush3.bf16.msra.mxu1 %v2455_v33  ;;  %v980_v33 = vrot.slane %v2739_v18, 7 }
 0x4ba   : > { %2086 = vmatprep.subr.bf16.mxu1 %v2272_v20 }
 0x4bb   : > { %v982_v32 = vmul.f32 %v980_v33, %v2362_v0 }
 0x4bd   : > { %2088 = vmatpush3.bf16.msra.mxu1 %v2461_v36  ;;  %v969_v36 = vmul.f32 5.0, %v2739_v18 }
 0x4be   : > { %2089 = vmatprep.subr.bf16.mxu1 %v2272_v20 }
 0x4bf   : > { %v970_v31 = vadd.f32 %v969_v36, %v968_v30 }
 0x4c0   : > { %v2161_v21 = vpop.eup %2160 }
 0x4c1   : > { %2091 = vmatpush3.bf16.msra.mxu1 %v2467_v39  ;;  %v1291_v23 = vrot.slane %v2161_v21, 4  ;;  %v984_v39 = vrot.slane %v2746_v25, 7 }
 0x4c2   : > { %2092 = vmatprep.subr.bf16.mxu1 %v2272_v20  ;;  %v971_v20 = vadd.f32 140.0, %v970_v31 }
 0x4c3   : > { %v1305_v24 = vsel %vm1272_vm14, %v2718_v49, %v1291_v23  ;;  %v986_v34 = vsub.f32 %v982_v32, %v984_v39  ;;  %v1124_v23 = vstv %s1123_s13  ;;  %s2178_s13 = sshll.u32 %s2275_s17, 4  ;;  %s2179_s13 = int_to_ptr.vmem [resolvable:$false] %s2178_s13 }
 0x4c4   : > { %v972_v37 = vsub.f32 %v971_v20, %v2746_v25  ;;  %vm1125_vm2 = vcmp.eq.s32.totalorder %v1124_v23, 1  ;;  %s2180_s23 = scalar_lea.vmem %s2179_s13, 256  ;;  %p2181_p11 = scmp.lt.s32.totalorder %s2816_s26, %s2179_s13 }
 0x4c5   : > { %2094 = vmatpush3.bf16.msra.mxu1 %v2473_v42  ;;  %v974_v42 = vrot.slane %v2524_v60, 5  ;;  %v988_v40 = vrot.slane %v986_v34, 1  ;;  %p2182_p12 = scmp.lt.s32.totalorder %s2180_s23, %s2174_s12 }
 0x4c7   : > { %v990_v46 = vmul.f32 %v988_v40, %v2362_v0  ;;  %p2183_p13 = por %p2182_p12, %p2181_p11 }
 0x4c9   : > { %v991_v51 = vadd.f32 %v990_v46, %v2746_v25  ;;  %p2184_p0 = pnand %p2183_p13, %p2177_p10 }
 0x57b   : > { %v963_v38 = vpop.f32.mrb[4].mxu1 }
 0x57c   : > { %v973_v41 = vadd.f32 %v972_v37, %v963_v38  ;;  %v1832_v43 = vpop.f32.mrb[5].mxu1 }
 0x57e   : > { %v976_v44 = vadd.f32 %v974_v42, %v973_v41 }
 0x580   : > { %v977_v47 = vadd.f32 0.1, %v976_v44 }
 0x582   : > { %v978_v49 = vadd.f32 %v977_v47, %v2739_v18 }
 0x584   : > { %v1475_v52 = vadd.f32 -30.0, %v978_v49  ;;  %vm994_vm0 = vcmp.ge.f32.partialorder %v978_v49, 30.0 }
 0x585   : > { %v1002_v53 = vsel %vm994_vm0, %v2514_v55, %v978_v49  ;;  %v1004_v54 = vsel %vm994_vm0, 1.0, %v993_v50  ;;  %v1003_v56 = vsel %vm994_vm0, %v2530_v7, %v991_v51 }
 0x586   : > { %v1476_v11 = vmul.f32 -1.442695, %v1475_v52  ;;  %v1010_v57 = vsel %vm1009_vm15, %v1002_v53, %v2739_v18  ;;  %v1012_v58 = vsel %vm1009_vm15, %v1004_v54, %v2742_v19  ;;  %v1258_v59 = vrot.slane %v1002_v53, 3 }
 0x587   : > { %1866 = vmatmul.mubr.f32.vlgmr.msra.gmra.mrb[6].mxu0 %v1012_v58  ;;  %v1011_v61 = vsel %vm1009_vm15, %v1003_v56, %v2746_v25  ;;  %v1083_v5 = vmul.f32 0.04, %v1010_v57  ;;  %v1096_v8 = vrot.slane %v1010_v57, 7  ;;  %v1085_v9 = vmul.f32 5.0, %v1010_v57 }
 0x588   : > { %2162 = vpow2.f32 %v1476_v11  ;;  %v1275_v62 = vsel %vm1274_vm1, %v1273_v26, %v1258_v59  ;;  %v1100_v13 = vrot.slane %v1011_v61, 7  ;;  %v1108_v28 = vmul.f32 %v1012_v58, %v2575_v35 }
 0x589   : > { %v1084_v6 = vmul.f32 %v1083_v5, %v1010_v57  ;;  %v1098_v12 = vmul.f32 %v1096_v8, %v2362_v0  ;;  %v1206_v59 = vrot.slane %v2524_v60, 7 }
 0x58a   : > { %v1109_v27 = vsub.f32 %v1012_v58, %v1108_v28 }
 0x58b   : > { %v1086_v10 = vadd.f32 %v1085_v9, %v1084_v6  ;;  %v1102_v15 = vsub.f32 %v1098_v12, %v1100_v13 }
 0x58d   : > { %v1087_v14 = vadd.f32 140.0, %v1086_v10  ;;  %v1104_v19 = vrot.slane %v1102_v15, 1 }
 0x58f   : > { %v1088_v16 = vsub.f32 %v1087_v14, %v1011_v61  ;;  %v1106_v29 = vmul.f32 %v1104_v19, %v2362_v0 }
 0x591   : > { %v1107_v30 = vadd.f32 %v1106_v29, %v1011_v61 }
 0x592   : > { %v2163_v63 = vpop.eup %2162 }
 0x593   : > { %v999_v1 = vadd.f32 1.0, %v2163_v63 }
 0x595   : > { %2164 = vrcp.f32 %v999_v1 }
 0x59f   : > { %v2165_v2 = vpop.eup %2164 }
 0x5a0   : > { %v1294_v3 = vrot.slane %v2165_v2, 3 }
 0x5a2   : > { %v1306_v4 = vsel %vm1274_vm1, %v1305_v24, %v1294_v3  ;;  %v1240_v3 = vstv %s1239_s25 }
 0x5a3   : > { %vm1241_vm6 = vcmp.eq.s32.totalorder %v1240_v3, 1 }
 0x65a   : > { %v1079_v18 = vpop.f32.mrb[6].mxu0 }
 0x65b   : > { %v1089_v22 = vadd.f32 %v1088_v16, %v1079_v18  ;;  %v1867_v25 = vpop.f32.mrb[7].mxu0 }
 0x65d   : > { %v1092_v26 = vadd.f32 %v1090_v17, %v1089_v22 }
 0x65f   : > { %v1093_v21 = vadd.f32 0.1, %v1092_v26 }
 0x661   : > { %v1094_v24 = vadd.f32 %v1093_v21, %v1010_v57 }
 0x663   : > { %v1477_v33 = vadd.f32 -30.0, %v1094_v24  ;;  %vm1110_vm3 = vcmp.ge.f32.partialorder %v1094_v24, 30.0 }
 0x664   : > { %v1118_v36 = vsel %vm1110_vm3, %v2514_v55, %v1094_v24  ;;  %v1120_v31 = vsel %vm1110_vm3, 1.0, %v1109_v27  ;;  %v1119_v32 = vsel %vm1110_vm3, %v2530_v7, %v1107_v30 }
 0x665   : > { %v1478_v39 = vmul.f32 -1.442695, %v1477_v33  ;;  %v1126_v20 = vsel %vm1125_vm2, %v1118_v36, %v1010_v57  ;;  %v1128_v34 = vsel %vm1125_vm2, %v1120_v31, %v1012_v58  ;;  %v1127_v37 = vsel %vm1125_vm2, %v1119_v32, %v1011_v61 }
 0x666   : > { %1901 = vmatmul.mubr.f32.vlgmr.msra.gmra.mrb[6].mxu1 %v1128_v34  ;;  %v1199_v42 = vmul.f32 0.04, %v1126_v20  ;;  %v1212_v38 = vrot.slane %v1126_v20, 7  ;;  %v1261_v40 = vrot.slane %v1118_v36, 2  ;;  %v1201_v43 = vmul.f32 5.0, %v1126_v20 }
 0x667   : > { %2166 = vpow2.f32 %v1478_v39  ;;  %v1216_v45 = vrot.slane %v1127_v37, 7  ;;  %v1224_v1 = vmul.f32 %v1128_v34, %v2575_v35 }
 0x668   : > { %v1200_v41 = vmul.f32 %v1199_v42, %v1126_v20  ;;  %v1214_v44 = vmul.f32 %v1212_v38, %v2362_v0  ;;  %v1277_v46 = vsel %vm1276_vm4, %v1275_v62, %v1261_v40 }
 0x669   : > { %v1225_v6 = vsub.f32 %v1128_v34, %v1224_v1 }
 0x66a   : > { %v1202_v47 = vadd.f32 %v1201_v43, %v1200_v41  ;;  %v1218_v48 = vsub.f32 %v1214_v44, %v1216_v45 }
 0x66c   : > { %v1203_v49 = vadd.f32 140.0, %v1202_v47  ;;  %v1220_v50 = vrot.slane %v1218_v48, 1 }
 0x66e   : > { %v1204_v51 = vsub.f32 %v1203_v49, %v1127_v37  ;;  %v1222_v52 = vmul.f32 %v1220_v50, %v2362_v0 }
 0x670   : > { %v1223_v53 = vadd.f32 %v1222_v52, %v1127_v37 }
 0x671   : > { %v2167_v54 = vpop.eup %2166 }
 0x672   : > { %v1115_v56 = vadd.f32 1.0, %v2167_v54 }
 0x674   : > { %2168 = vrcp.f32 %v1115_v56 }
 0x67e   : > { %v2169_v11 = vpop.eup %2168 }
 0x67f   : > { %v1297_v57 = vrot.slane %v2169_v11, 2 }
 0x681   : > { %v2800_v58 = vsel %vm1276_vm4, %v1306_v4, %v1297_v57 }
 0x739   : > { %v1195_v61 = vpop.f32.mrb[6].mxu1 }
 0x73a   : > { %v1205_v62 = vadd.f32 %v1204_v51, %v1195_v61  ;;  %v1902_v63 = vpop.f32.mrb[7].mxu1 }
 0x73c   : > { %v1208_v0 = vadd.f32 %v1206_v59, %v1205_v62 }
 0x73e   : > { %v1209_v2 = vadd.f32 0.1, %v1208_v0 }
 0x740   : > { %v1210_v5 = vadd.f32 %v1209_v2, %v1126_v20 }
 0x742   : > { %vm1226_vm7 = vcmp.ge.f32.partialorder %v1210_v5, 30.0  ;;  %v1479_v4 = vadd.f32 -30.0, %v1210_v5 }
 0x743   : > { %v1235_v8 = vsel %vm1226_vm7, %v2530_v7, %v1223_v53  ;;  %v1236_v60 = vsel %vm1226_vm7, 1.0, %v1225_v6  ;;  %v1234_v9 = vsel %vm1226_vm7, %v2514_v55, %v1210_v5 }
 0x744   : > { %v1480_v10 = vmul.f32 -1.442695, %v1479_v4  ;;  %v1243_v35 = vsel %vm1241_vm6, %v1235_v8, %v1127_v37  ;;  %v1244_v12 = vsel %vm1241_vm6, %v1236_v60, %v1128_v34  ;;  %v1242_v13 = vsel %vm1241_vm6, %v1234_v9, %v1126_v20 }
 0x745   : > { %v1311_v14 = vrot.slane %v1243_v35, 7  ;;  %v1314_v15 = vrot.slane %v1244_v12, 6  ;;  %v1264_v16 = vrot.slane %v1234_v9, 1 }
 0x746   : > { %2170 = vpow2.f32 %v1480_v10 }
 0x747   : > { %v1279_v55 = vsel %vm1278_vm9, %v1277_v46, %v1264_v16  ;;  %v1316_v7 = vsel %vm1266_vm5, %v1242_v13, %v1311_v14 }
 0x748   : > { %1280 = vst [vmem:[%s2371_s14] sm:$0xff] %v1279_v55  ;;  %v1317_v17 = vsel %vm1268_vm8, %v1316_v7, %v1314_v15 }
 0x749   : > { %1318 = vst [vmem:[%s2904_s5] sm:$0x7] %v1317_v17 }
 0x74a   : > { %2187 = shalt.err (!%p2184_p0)
}
 0x74b   : > { %s2188_s14 = scalar_lea.hbm %s2814_s8, 128  ;;  %s2192_s7 = scalar_lea.hbm %s2902_s3, 256 }
 0x74c   : > { %p2189_p1 = scmp.ne.s32.totalorder %s2814_s8, %s2188_s14  ;;  %p2193_p4 = scmp.lt.u32.totalorder %s2814_s8, %s2902_s3 }
 0x74d   : > { %p2194_p7 = scmp.lt.u32.totalorder %s2192_s7, %s2188_s14  ;;  %p2196_p9 = scmp.lt.u32.totalorder %s2188_s14, %s2814_s8 }
 0x74e   : > { %p2190_p2 = pnand %p2189_p1, %p2345_p5 }
 0x74f   : > { %p2195_p8 = por %p2194_p7, %p2193_p4 }
 0x750   : > { %p2191_p3 = pneg %p2190_p2 }
 0x751   : > { %p2197_p10 = por %p2196_p9, %p2195_p8 }
 0x753   : > { %p2198_p11 = pnand %p2197_p10, %p2191_p3 }
 0x755   : > { %2201 = shalt.err (!%p2198_p11)
}
 0x756   : > { %2095 = dma.vmem_to_hbm [thread:$0]  (%p2345_p5), %s2816_s26, 128, %s2814_s8, %s1320_s11   ;;  %v2171_v18 = vpop.eup %2170 }
 0x757   : > { %v1231_v19 = vadd.f32 1.0, %v2171_v18  ;;  %s1351_s12 = sshll.u32 %s2373_s15, 4  ;;  %s2853_s23 = scalar_lea.hbm %s2903_s4, %s1483_s16  ;;  %s2855_s12 = int_to_ptr.vmem [resolvable:$true] %s1351_s12 }
 0x758   : > { %s1325_s26 = scalar_lea.sflag [#allocation6], %s2356_s30  ;;  %s2202_s8 = scalar_lea.vmem %s2855_s12, 128 }
 0x759   : > { %2172 = vrcp.f32 %v1231_v19  ;;  %p2203_p12 = scmp.ne.s32.totalorder %s2855_s12, %s2202_s8  ;;  %s2276_s22 = smov [#allocation5]  }
 0x75a   : > { %s2206_s11 = sshll.u32 %s2276_s22, 4  ;;  %s2207_s11 = int_to_ptr.vmem [resolvable:$false] %s2206_s11 }
 0x75b   : > { %p2204_p13 = pnand %p2203_p12, %p2345_p5  ;;  %s2208_s16 = scalar_lea.vmem %s2207_s11, 256 }
 0x75c   : > { %p2209_p1 = scmp.lt.s32.totalorder %s2855_s12, %s2207_s11  ;;  %p2210_p2 = scmp.lt.s32.totalorder %s2208_s16, %s2202_s8 }
 0x75d   : > { %p2205_p0 = pneg %p2204_p13 }
 0x75e   : > { %p2211_p3 = por %p2210_p2, %p2209_p1 }
 0x760   : > { %p2212_p4 = pnand %p2211_p3, %p2205_p0 }
 0x763   : > { %v2173_v22 = vpop.eup %2172 }
 0x764   : > { %v1300_v25 = vrot.slane %v2173_v22, 1 }
 0x766   : > { %v1308_v26 = vsel %vm1278_vm9, %v2800_v58, %v1300_v25 }
 0x767   : > { %1309 = vst [vmem:[%s2373_s15] sm:$0xff] %v1308_v26 }
 0x768   : > { %2215 = shalt.err (!%p2212_p4)
}
 0x769   : > { %s2216_s30 = scalar_lea.hbm %s2853_s23, 128  ;;  %s2220_s25 = scalar_lea.hbm %s2903_s4, 256 }
 0x76a   : > { %p2217_p7 = scmp.ne.s32.totalorder %s2853_s23, %s2216_s30  ;;  %p2221_p10 = scmp.lt.u32.totalorder %s2853_s23, %s2903_s4 }
 0x76b   : > { %p2222_p11 = scmp.lt.u32.totalorder %s2220_s25, %s2216_s30  ;;  %p2224_p13 = scmp.lt.u32.totalorder %s2216_s30, %s2853_s23 }
 0x76c   : > { %p2218_p8 = pnand %p2217_p7, %p2345_p5 }
 0x76d   : > { %p2223_p12 = por %p2222_p11, %p2221_p10 }
 0x76e   : > { %p2219_p9 = pneg %p2218_p8 }
 0x76f   : > { %p2225_p0 = por %p2224_p13, %p2223_p12 }
 0x771   : > { %p2226_p1 = pnand %p2225_p0, %p2219_p9 }
 0x773   : > { %2229 = shalt.err (!%p2226_p1)
}
 0x774   : > { %2096 = dma.vmem_to_hbm [thread:$0]  (%p2345_p5), %s2855_s12, 128, %s2853_s23, %s1325_s26  }
 0x775 PF: > { %p2106_p2 = scmp.ge.s32.totalorder %s2270_s21, 2  ;;  %s1369_s9 = sand.u32 1, %s2258_s18  }
 0x776   : > { %s1370_s10 = scalar_lea.sflag [#allocation4], %s1369_s9 }
 0x777   : > { %p2100_p3 = pnand %p2106_p2, %p2349_p6 }
 0x779   : > { %2249 = dma.done.wait (!%p2100_p3), %s1370_s10, 128  }
 0x77a   : > { %2251 = vsyncadd (!%p2100_p3), %s1370_s10, 4294967168  ;;  %s1379_s17 = scalar_lea.sflag [#allocation6], %s1369_s9 }
 0x77b   : > { %2253 = dma.done.wait (!%p2100_p3), %s1379_s17, 128  }
 0x77c   : > { %2255 = vsyncadd (!%p2100_p3), %s1379_s17, 4294967168  ;;  %p19_p5 = scmp.ge.s32.totalorder %s2332_s24, 4   ;;  %s2910_s18 = smov %s2262_s19 }
 0x77d   : > { %s2911_s19 = smov %s2266_s20  ;;  %s2912_s20 = smov %s2343_s27 }
 0x77e   : > { %s2913_s21 = smov %s2332_s24  ;;  %21 = sbr.rel (!%p19_p5) target bundleno = 5 (0x5), region = 135 }
 0x785   :  { %1384 = vsyncpa [#allocation4], 1 }
 0x786   :  { %1386 = vsyncpa [#allocation4 + $0x1], 1 }
 0x787   :  { %1387 = vsyncpa [#allocation6], 1 }
 0x788   :  { %1389 = vsyncpa [#allocation6 + $0x1], 1 }

</bundles_post_ra>
